<compile_context>
chip_gen: v5e
topology: v5e:2x2
jax: 0.10.0
libtpu: 0.0.40
codegen_flags: <defaults>
</compile_context>

<pallas_src>
import functools
import math

import jax
import jax.numpy as jnp
from jax.experimental import pallas as pl
from jax.experimental.pallas import tpu as pltpu


def _sigmoid(z):
    # tanh-based sigmoid: rides the EUP transcendental slot (no VALU divide);
    # used identically in the kernel and the reference so the check is tight.
    return 0.5 * (jnp.tanh(0.5 * z) + 1.0)


_PER_LAYER_REFS = 7   # (w_ih_t, w_hh_t, bias, w_h0, b_h0, w_c0, b_c0)


def _fused_lstm_decoder_kernel(x_ref, init_ref, *refs, nlayers, nhid):
    """One grid step = one TIME BLOCK through all stacked LSTM layers.

    x_ref   : (TB*bsz, in_dim)  bf16   flattened (time, batch) input block
    init_ref: (bsz, ninp)       bf16   input_init (resident)
    per layer l (resident, constant index maps):
        w_ih_t (in_dim_l, 4*nhid) bf16, w_hh_t (nhid, 4*nhid) bf16,
        bias   (1, 4*nhid) f32 (= b_ih + b_hh),
        w_h0 (ninp, nhid) bf16, b_h0 (1, nhid) f32, w_c0, b_c0
    y_ref   : (TB*bsz, nhid)    bf16   output block
    h_scr/c_scr : (nlayers, bsz, nhid) f32 state carried across grid steps
    buf     : (TB*bsz, nhid)    bf16   inter-layer activation block (VMEM only)
    """
    per = _PER_LAYER_REFS
    layer_refs = refs[:per * nlayers]
    y_ref = refs[per * nlayers]
    h_scr, c_scr, buf = refs[per * nlayers + 1:]

    bsz = init_ref.shape[0]
    tb = x_ref.shape[0] // bsz

    def layer_p(l):
        return layer_refs[per * l: per * (l + 1)]

    # --- first time block: fused init-hidden linears (one per layer) ---------
    @pl.when(pl.program_id(0) == 0)
    def _init_state():
        x0 = init_ref[...]
        for l in range(nlayers):
            _, _, _, w_h0, b_h0, w_c0, b_c0 = layer_p(l)
            h_scr[l] = (jnp.dot(x0, w_h0[...],
                                preferred_element_type=jnp.float32) + b_h0[...])
            c_scr[l] = (jnp.dot(x0, w_c0[...],
                                preferred_element_type=jnp.float32) + b_c0[...])

    # --- stacked layers over this time block ---------------------------------
    for l in range(nlayers):
        w_ih, w_hh, bias, _, _, _, _ = layer_p(l)
        src = x_ref if l == 0 else buf                 # input block of layer l
        dst = y_ref if l == nlayers - 1 else buf       # output block of layer l

        # Hoisted input projection: ONE big MXU matmul (TB*bsz rows) + combined
        # bias for the whole block, instead of TB tiny matmuls in the recurrence.
        gates_x = (jnp.dot(src[...], w_ih[...],
                           preferred_element_type=jnp.float32) + bias[...])
        # gates_x: (TB*bsz, 4*nhid) f32; PyTorch gate order [i | f | g | o].

        h = h_scr[l]
        c = c_scr[l]
        cdt = w_hh.dtype

        # Fully-unrolled sequential time loop (== lax.fori_loop(unroll=True));
        # only the small recurrent h @ W_hh matmul remains inside.
        for t in range(tb):
            g = gates_x[t * bsz:(t + 1) * bsz, :] + jnp.dot(
                h.astype(cdt), w_hh[...], preferred_element_type=jnp.float32)
            i_g = _sigmoid(g[:, 0 * nhid:1 * nhid])
            f_g = _sigmoid(g[:, 1 * nhid:2 * nhid])
            g_g = jnp.tanh(g[:, 2 * nhid:3 * nhid])
            o_g = _sigmoid(g[:, 3 * nhid:4 * nhid])
            c = f_g * c + i_g * g_g
            h = o_g * jnp.tanh(c)
            dst[pl.ds(t * bsz, bsz), :] = h.astype(dst.dtype)

        h_scr[l] = h
        c_scr[l] = c


def rnn_decoder_forward(input_init, emb, layer_params, *, nhid,
                        time_block=32, compute_dtype=jnp.bfloat16):
    """Pallas equivalent of RNN_decoder.forward (LSTM, nlayers stacked, fused)."""
    T, bsz, emb_dim = emb.shape
    ninp = input_init.shape[1]
    nlayers = len(layer_params)
    cdt = compute_dtype

    # Time-block size: amortize per-grid-step overhead and give the hoisted
    # input projection tb*bsz MXU rows.  Keep tb*bsz a multiple of 8 (sublane
    # tile) so the flattened (tb*bsz, .) blocks are legal BlockSpec shapes.
    tb = max(1, min(time_block, T))
    mult = 8 // math.gcd(bsz, 8)
    tb = ((tb + mult - 1) // mult) * mult
    t_pad = ((T + tb - 1) // tb) * tb
    n_blocks = t_pad // tb

    x = emb.astype(cdt)
    if t_pad != T:
        x = jnp.pad(x, ((0, t_pad - T), (0, 0), (0, 0)))
    # Flatten (time, batch) -> every block / matmul in the kernel is plain 2-D.
    x2d = x.reshape(t_pad * bsz, emb_dim)
    init = input_init.astype(cdt)

    flat_args = [x2d, init]
    in_specs = [
        pl.BlockSpec((tb * bsz, emb_dim), lambda b: (b, 0)),   # streamed input
        pl.BlockSpec((bsz, ninp), lambda b: (0, 0)),           # input_init
    ]
    in_dim = emb_dim
    for p in layer_params:
        flat_args += [
            p["w_ih_t"].astype(cdt),
            p["w_hh_t"].astype(cdt),
            (p["b_ih"] + p["b_hh"]).astype(jnp.float32),       # combined bias
            p["w_h0"].astype(cdt),
            p["b_h0"].astype(jnp.float32),
            p["w_c0"].astype(cdt),
            p["b_c0"].astype(jnp.float32),
        ]
        in_specs += [
            pl.BlockSpec((in_dim, 4 * nhid), lambda b: (0, 0)),
            pl.BlockSpec((nhid, 4 * nhid), lambda b: (0, 0)),
            pl.BlockSpec((1, 4 * nhid), lambda b: (0, 0)),
            pl.BlockSpec((ninp, nhid), lambda b: (0, 0)),
            pl.BlockSpec((1, nhid), lambda b: (0, 0)),
            pl.BlockSpec((ninp, nhid), lambda b: (0, 0)),
            pl.BlockSpec((1, nhid), lambda b: (0, 0)),
        ]
        in_dim = nhid

    kernel = functools.partial(_fused_lstm_decoder_kernel,
                               nlayers=nlayers, nhid=nhid)
    out2d = pl.pallas_call(
        kernel,
        out_shape=jax.ShapeDtypeStruct((t_pad * bsz, nhid), cdt),
        grid=(n_blocks,),
        in_specs=in_specs,
        out_specs=pl.BlockSpec((tb * bsz, nhid), lambda b: (b, 0)),
        scratch_shapes=[
            pltpu.VMEM((nlayers, bsz, nhid), jnp.float32),     # h carry (f32)
            pltpu.VMEM((nlayers, bsz, nhid), jnp.float32),     # c carry (f32)
            pltpu.VMEM((tb * bsz, nhid), cdt),                 # inter-layer acts
        ],
        compiler_params=pltpu.CompilerParams(
            dimension_semantics=("arbitrary",),                # time is sequential
            vmem_limit_bytes=32 * 1024 * 1024),
    )(*flat_args)

    out = out2d.reshape(t_pad, bsz, nhid)
    return out[:T]


def ext_emb_to_seq_forward(input_init, emb, decoder_params, *, nhid,
                           time_block=32, compute_dtype=jnp.bfloat16):
    """Pallas equivalent of ext_emb_to_seq.forward with all-LSTM decoders."""
    hidden_states = emb
    for layer_params in decoder_params:
        hidden_states = rnn_decoder_forward(
            input_init, hidden_states, layer_params, nhid=nhid,
            time_block=time_block, compute_dtype=compute_dtype)
    return hidden_states.astype(jnp.float32)


# ----------------------- pure-JAX reference (for checking) -------------------
def _rnn_decoder_ref(input_init, emb, layer_params, *, nhid,
                     compute_dtype=jnp.bfloat16):
    cdt = compute_dtype
    x = emb.astype(cdt)
    x0 = input_init.astype(cdt)
    for p in layer_params:
        w_ih = p["w_ih_t"].astype(cdt)
        w_hh = p["w_hh_t"].astype(cdt)
        bias = (p["b_ih"] + p["b_hh"]).astype(jnp.float32)
        h = jnp.dot(x0, p["w_h0"].astype(cdt),
                    preferred_element_type=jnp.float32) + p["b_h0"]
        c = jnp.dot(x0, p["w_c0"].astype(cdt),
                    preferred_element_type=jnp.float32) + p["b_c0"]

        def step(carry, x_t):
            h, c = carry
            gx = jnp.dot(x_t, w_ih, preferred_element_type=jnp.float32) + bias
            g = gx + jnp.dot(h.astype(cdt), w_hh,
                             preferred_element_type=jnp.float32)
            i = _sigmoid(g[:, 0 * nhid:1 * nhid])
            f = _sigmoid(g[:, 1 * nhid:2 * nhid])
            gg = jnp.tanh(g[:, 2 * nhid:3 * nhid])
            o = _sigmoid(g[:, 3 * nhid:4 * nhid])
            c = f * c + i * gg
            h = o * jnp.tanh(c)
            return (h, c), h.astype(cdt)

        (_, _), ys = jax.lax.scan(step, (h, c), x)
        x = ys
    return x


def ext_emb_to_seq_ref(input_init, emb, decoder_params, *, nhid,
                       compute_dtype=jnp.bfloat16):
    hidden = emb
    for layer_params in decoder_params:
        hidden = _rnn_decoder_ref(input_init, hidden, layer_params, nhid=nhid,
                                  compute_dtype=compute_dtype)
    return hidden.astype(jnp.float32)


def _make_layer_params(key, in_dim, ninp, nhid):
    ks = jax.random.split(key, 8)
    s = 1.0 / math.sqrt(nhid)
    return {
        # init_hid_linear_{1,2}: weight.T (ninp, nhid), bias (1, nhid)
        "w_h0": jax.random.uniform(ks[0], (ninp, nhid), jnp.float32, -0.1, 0.1),
        "b_h0": jax.random.uniform(ks[1], (1, nhid), jnp.float32, -0.5, 0.5),
        "w_c0": jax.random.uniform(ks[2], (ninp, nhid), jnp.float32, -0.1, 0.1),
        "b_c0": jax.random.uniform(ks[3], (1, nhid), jnp.float32, -0.5, 0.5),
        # nn.LSTM weight_ih/weight_hh transposed, PyTorch gate order [i|f|g|o]
        "w_ih_t": jax.random.uniform(ks[4], (in_dim, 4 * nhid), jnp.float32, -s, s),
        "b_ih": jax.random.uniform(ks[5], (1, 4 * nhid), jnp.float32, -s, s),
        "w_hh_t": jax.random.uniform(ks[6], (nhid, 4 * nhid), jnp.float32, -s, s),
        "b_hh": jax.random.uniform(ks[7], (1, 4 * nhid), jnp.float32, -s, s),
    }


if __name__ == "__main__":
    # Small shapes consistent with the module: seq T=8, batch=2, emb_dim=32,
    # ninp=16, nhid=32, nlayers=2, model_type_list=['LSTM'].
    T, bsz = 8, 2
    emb_dim, ninp, nhid, nlayers = 32, 16, 32, 2

    key = jax.random.PRNGKey(0)
    k_init, k_emb, k_par = jax.random.split(key, 3)

    input_init = jax.random.normal(k_init, (bsz, ninp), dtype=jnp.float32)
    emb = jax.random.normal(k_emb, (T, bsz, emb_dim), dtype=jnp.float32)

    layer_keys = jax.random.split(k_par, nlayers)
    layer_params = []
    in_dim = emb_dim
    for l in range(nlayers):
        layer_params.append(_make_layer_params(layer_keys[l], in_dim, ninp, nhid))
        in_dim = nhid
    decoder_params = [layer_params]        # one 'LSTM' RNN_decoder in the list

    out = ext_emb_to_seq_forward(input_init, emb, decoder_params, nhid=nhid)
    out = jax.block_until_ready(out)

    ref = ext_emb_to_seq_ref(input_init, emb, decoder_params, nhid=nhid)
    ref = jax.block_until_ready(ref)

    assert out.shape == (T, bsz, nhid), out.shape
    assert out.dtype == jnp.float32
    # bf16 matmul inputs / f32 accumulation in BOTH kernel and reference;
    # tolerance covers a couple of bf16 ulps of accumulation-order drift.
    assert jnp.allclose(out, ref, atol=2e-2, rtol=2e-2), \
        "Pallas ext_emb_to_seq (LSTM) mismatch vs reference"
    print("KERNEL_OK")
</pallas_src>

<mosaic_0001>
module attributes {stable_mosaic.version = 11 : i64} {
  func.func @_fused_lstm_decoder_kernel(%arg0: i32, %arg1: memref<16x32xbf16, #tpu.memory_space<vmem>>, %arg2: memref<2x16xbf16, #tpu.memory_space<vmem>>, %arg3: memref<32x128xbf16, #tpu.memory_space<vmem>>, %arg4: memref<32x128xbf16, #tpu.memory_space<vmem>>, %arg5: memref<1x128xf32, #tpu.memory_space<vmem>>, %arg6: memref<16x32xbf16, #tpu.memory_space<vmem>>, %arg7: memref<1x32xf32, #tpu.memory_space<vmem>>, %arg8: memref<16x32xbf16, #tpu.memory_space<vmem>>, %arg9: memref<1x32xf32, #tpu.memory_space<vmem>>, %arg10: memref<32x128xbf16, #tpu.memory_space<vmem>>, %arg11: memref<32x128xbf16, #tpu.memory_space<vmem>>, %arg12: memref<1x128xf32, #tpu.memory_space<vmem>>, %arg13: memref<16x32xbf16, #tpu.memory_space<vmem>>, %arg14: memref<1x32xf32, #tpu.memory_space<vmem>>, %arg15: memref<16x32xbf16, #tpu.memory_space<vmem>>, %arg16: memref<1x32xf32, #tpu.memory_space<vmem>>, %arg17: memref<16x32xbf16, #tpu.memory_space<vmem>>, %arg18: memref<2x2x32xf32, #tpu.memory_space<vmem>>, %arg19: memref<2x2x32xf32, #tpu.memory_space<vmem>>, %arg20: memref<16x32xbf16, #tpu.memory_space<vmem>>) attributes {dimension_semantics = [#tpu.dimension_semantics<arbitrary>], iteration_bounds = array<i64: 1>, scalar_prefetch = 0 : i64, scratch_operands = 3 : i64, tpu.core_type = #tpu.core_type<tc>, window_params = [{transform_indices = @transform_0, window_bounds = array<i64: 16, 32>}, {pipeline_mode = #tpu.pipeline_mode<synchronous>, transform_indices = @transform_1, window_bounds = array<i64: 2, 16>}, {pipeline_mode = #tpu.pipeline_mode<synchronous>, transform_indices = @transform_2, window_bounds = array<i64: 32, 128>}, {pipeline_mode = #tpu.pipeline_mode<synchronous>, transform_indices = @transform_3, window_bounds = array<i64: 32, 128>}, {pipeline_mode = #tpu.pipeline_mode<synchronous>, transform_indices = @transform_4, window_bounds = array<i64: 1, 128>}, {pipeline_mode = #tpu.pipeline_mode<synchronous>, transform_indices = @transform_5, window_bounds = array<i64: 16, 32>}, {pipeline_mode = #tpu.pipeline_mode<synchronous>, transform_indices = @transform_6, window_bounds = array<i64: 1, 32>}, {pipeline_mode = #tpu.pipeline_mode<synchronous>, transform_indices = @transform_7, window_bounds = array<i64: 16, 32>}, {pipeline_mode = #tpu.pipeline_mode<synchronous>, transform_indices = @transform_8, window_bounds = array<i64: 1, 32>}, {pipeline_mode = #tpu.pipeline_mode<synchronous>, transform_indices = @transform_9, window_bounds = array<i64: 32, 128>}, {pipeline_mode = #tpu.pipeline_mode<synchronous>, transform_indices = @transform_10, window_bounds = array<i64: 32, 128>}, {pipeline_mode = #tpu.pipeline_mode<synchronous>, transform_indices = @transform_11, window_bounds = array<i64: 1, 128>}, {pipeline_mode = #tpu.pipeline_mode<synchronous>, transform_indices = @transform_12, window_bounds = array<i64: 16, 32>}, {pipeline_mode = #tpu.pipeline_mode<synchronous>, transform_indices = @transform_13, window_bounds = array<i64: 1, 32>}, {pipeline_mode = #tpu.pipeline_mode<synchronous>, transform_indices = @transform_14, window_bounds = array<i64: 16, 32>}, {pipeline_mode = #tpu.pipeline_mode<synchronous>, transform_indices = @transform_15, window_bounds = array<i64: 1, 32>}, {transform_indices = @transform_16, window_bounds = array<i64: 16, 32>}]} {
    %c0_i32 = arith.constant 0 : i32
    %0 = arith.cmpi eq, %arg0, %c0_i32 : i32
    %1 = arith.extui %0 : i1 to i32
    %c0_i32_0 = arith.constant 0 : i32
    %2 = arith.cmpi ne, %1, %c0_i32_0 : i32
    scf.if %2 {
      %c0_253 = arith.constant 0 : index
      %c0_254 = arith.constant 0 : index
      %643 = vector.load %arg2[%c0_253, %c0_254] : memref<2x16xbf16, #tpu.memory_space<vmem>>, vector<2x16xbf16>
      %c0_255 = arith.constant 0 : index
      %c0_256 = arith.constant 0 : index
      %644 = vector.load %arg6[%c0_255, %c0_256] : memref<16x32xbf16, #tpu.memory_space<vmem>>, vector<16x32xbf16>
      %cst_257 = arith.constant dense<0.000000e+00> : vector<2x32xf32>
      %645 = tpu.matmul %643, %644, %cst_257 {dimension_numbers = #tpu.dot_dimension_numbers<[1], [0], [0], [1], [0, 0, 1, 1], [], []>} : vector<2x16xbf16>, vector<16x32xbf16>, vector<2x32xf32> -> vector<2x32xf32>
      %c0_258 = arith.constant 0 : index
      %c0_259 = arith.constant 0 : index
      %646 = vector.load %arg7[%c0_258, %c0_259] : memref<1x32xf32, #tpu.memory_space<vmem>>, vector<1x32xf32>
      %647 = vector.broadcast %646 : vector<1x32xf32> to vector<2x32xf32>
      %648 = arith.addf %645, %647 : vector<2x32xf32>
      %c0_260 = arith.constant 0 : index
      %c0_261 = arith.constant 0 : index
      %c0_262 = arith.constant 0 : index
      %649 = vector.load %arg18[%c0_260, %c0_261, %c0_262] : memref<2x2x32xf32, #tpu.memory_space<vmem>>, vector<1x2x32xf32>
      %650 = vector.shape_cast %649 : vector<1x2x32xf32> to vector<2x32xf32>
      %651 = vector.shape_cast %648 : vector<2x32xf32> to vector<1x2x32xf32>
      tpu.vector_store %arg18[%c0_260, %c0_261, %c0_262], %651 {strides = array<i32>} : memref<2x2x32xf32, #tpu.memory_space<vmem>>, vector<1x2x32xf32>,
      %c0_263 = arith.constant 0 : index
      %c0_264 = arith.constant 0 : index
      %652 = vector.load %arg8[%c0_263, %c0_264] : memref<16x32xbf16, #tpu.memory_space<vmem>>, vector<16x32xbf16>
      %cst_265 = arith.constant dense<0.000000e+00> : vector<2x32xf32>
      %653 = tpu.matmul %643, %652, %cst_265 {dimension_numbers = #tpu.dot_dimension_numbers<[1], [0], [0], [1], [0, 0, 1, 1], [], []>} : vector<2x16xbf16>, vector<16x32xbf16>, vector<2x32xf32> -> vector<2x32xf32>
      %c0_266 = arith.constant 0 : index
      %c0_267 = arith.constant 0 : index
      %654 = vector.load %arg9[%c0_266, %c0_267] : memref<1x32xf32, #tpu.memory_space<vmem>>, vector<1x32xf32>
      %655 = vector.broadcast %654 : vector<1x32xf32> to vector<2x32xf32>
      %656 = arith.addf %653, %655 : vector<2x32xf32>
      %c0_268 = arith.constant 0 : index
      %c0_269 = arith.constant 0 : index
      %c0_270 = arith.constant 0 : index
      %657 = vector.load %arg19[%c0_268, %c0_269, %c0_270] : memref<2x2x32xf32, #tpu.memory_space<vmem>>, vector<1x2x32xf32>
      %658 = vector.shape_cast %657 : vector<1x2x32xf32> to vector<2x32xf32>
      %659 = vector.shape_cast %656 : vector<2x32xf32> to vector<1x2x32xf32>
      tpu.vector_store %arg19[%c0_268, %c0_269, %c0_270], %659 {strides = array<i32>} : memref<2x2x32xf32, #tpu.memory_space<vmem>>, vector<1x2x32xf32>,
      %c0_271 = arith.constant 0 : index
      %c0_272 = arith.constant 0 : index
      %660 = vector.load %arg13[%c0_271, %c0_272] : memref<16x32xbf16, #tpu.memory_space<vmem>>, vector<16x32xbf16>
      %cst_273 = arith.constant dense<0.000000e+00> : vector<2x32xf32>
      %661 = tpu.matmul %643, %660, %cst_273 {dimension_numbers = #tpu.dot_dimension_numbers<[1], [0], [0], [1], [0, 0, 1, 1], [], []>} : vector<2x16xbf16>, vector<16x32xbf16>, vector<2x32xf32> -> vector<2x32xf32>
      %c0_274 = arith.constant 0 : index
      %c0_275 = arith.constant 0 : index
      %662 = vector.load %arg14[%c0_274, %c0_275] : memref<1x32xf32, #tpu.memory_space<vmem>>, vector<1x32xf32>
      %663 = vector.broadcast %662 : vector<1x32xf32> to vector<2x32xf32>
      %664 = arith.addf %661, %663 : vector<2x32xf32>
      %c1_276 = arith.constant 1 : index
      %c0_277 = arith.constant 0 : index
      %c0_278 = arith.constant 0 : index
      %665 = vector.load %arg18[%c1_276, %c0_277, %c0_278] : memref<2x2x32xf32, #tpu.memory_space<vmem>>, vector<1x2x32xf32>
      %666 = vector.shape_cast %665 : vector<1x2x32xf32> to vector<2x32xf32>
      %667 = vector.shape_cast %664 : vector<2x32xf32> to vector<1x2x32xf32>
      tpu.vector_store %arg18[%c1_276, %c0_277, %c0_278], %667 {strides = array<i32>} : memref<2x2x32xf32, #tpu.memory_space<vmem>>, vector<1x2x32xf32>,
      %c0_279 = arith.constant 0 : index
      %c0_280 = arith.constant 0 : index
      %668 = vector.load %arg15[%c0_279, %c0_280] : memref<16x32xbf16, #tpu.memory_space<vmem>>, vector<16x32xbf16>
      %cst_281 = arith.constant dense<0.000000e+00> : vector<2x32xf32>
      %669 = tpu.matmul %643, %668, %cst_281 {dimension_numbers = #tpu.dot_dimension_numbers<[1], [0], [0], [1], [0, 0, 1, 1], [], []>} : vector<2x16xbf16>, vector<16x32xbf16>, vector<2x32xf32> -> vector<2x32xf32>
      %c0_282 = arith.constant 0 : index
      %c0_283 = arith.constant 0 : index
      %670 = vector.load %arg16[%c0_282, %c0_283] : memref<1x32xf32, #tpu.memory_space<vmem>>, vector<1x32xf32>
      %671 = vector.broadcast %670 : vector<1x32xf32> to vector<2x32xf32>
      %672 = arith.addf %669, %671 : vector<2x32xf32>
      %c1_284 = arith.constant 1 : index
      %c0_285 = arith.constant 0 : index
      %c0_286 = arith.constant 0 : index
      %673 = vector.load %arg19[%c1_284, %c0_285, %c0_286] : memref<2x2x32xf32, #tpu.memory_space<vmem>>, vector<1x2x32xf32>
      %674 = vector.shape_cast %673 : vector<1x2x32xf32> to vector<2x32xf32>
      %675 = vector.shape_cast %672 : vector<2x32xf32> to vector<1x2x32xf32>
      tpu.vector_store %arg19[%c1_284, %c0_285, %c0_286], %675 {strides = array<i32>} : memref<2x2x32xf32, #tpu.memory_space<vmem>>, vector<1x2x32xf32>,
    } else {
    }
    %c0 = arith.constant 0 : index
    %c0_1 = arith.constant 0 : index
    %3 = vector.load %arg1[%c0, %c0_1] : memref<16x32xbf16, #tpu.memory_space<vmem>>, vector<16x32xbf16>
    %c0_2 = arith.constant 0 : index
    %c0_3 = arith.constant 0 : index
    %4 = vector.load %arg3[%c0_2, %c0_3] : memref<32x128xbf16, #tpu.memory_space<vmem>>, vector<32x128xbf16>
    %cst = arith.constant dense<0.000000e+00> : vector<16x128xf32>
    %5 = tpu.matmul %3, %4, %cst {dimension_numbers = #tpu.dot_dimension_numbers<[1], [0], [0], [1], [0, 0, 1, 1], [], []>} : vector<16x32xbf16>, vector<32x128xbf16>, vector<16x128xf32> -> vector<16x128xf32>
    %c0_4 = arith.constant 0 : index
    %c0_5 = arith.constant 0 : index
    %6 = vector.load %arg5[%c0_4, %c0_5] : memref<1x128xf32, #tpu.memory_space<vmem>>, vector<1x128xf32>
    %7 = vector.broadcast %6 : vector<1x128xf32> to vector<16x128xf32>
    %8 = arith.addf %5, %7 : vector<16x128xf32>
    %c0_6 = arith.constant 0 : index
    %c0_7 = arith.constant 0 : index
    %c0_8 = arith.constant 0 : index
    %9 = vector.load %arg18[%c0_6, %c0_7, %c0_8] : memref<2x2x32xf32, #tpu.memory_space<vmem>>, vector<1x2x32xf32>
    %10 = vector.shape_cast %9 : vector<1x2x32xf32> to vector<2x32xf32>
    %c0_9 = arith.constant 0 : index
    %c0_10 = arith.constant 0 : index
    %c0_11 = arith.constant 0 : index
    %11 = vector.load %arg19[%c0_9, %c0_10, %c0_11] : memref<2x2x32xf32, #tpu.memory_space<vmem>>, vector<1x2x32xf32>
    %12 = vector.shape_cast %11 : vector<1x2x32xf32> to vector<2x32xf32>
    %13 = vector.extract_strided_slice %8 {offsets = [0, 0], sizes = [2, 128], strides = [1, 1]} : vector<16x128xf32> to vector<2x128xf32>
    %14 = arith.truncf %10 : vector<2x32xf32> to vector<2x32xbf16>
    %c0_12 = arith.constant 0 : index
    %c0_13 = arith.constant 0 : index
    %15 = vector.load %arg4[%c0_12, %c0_13] : memref<32x128xbf16, #tpu.memory_space<vmem>>, vector<32x128xbf16>
    %cst_14 = arith.constant dense<0.000000e+00> : vector<2x128xf32>
    %16 = tpu.matmul %14, %15, %cst_14 {dimension_numbers = #tpu.dot_dimension_numbers<[1], [0], [0], [1], [0, 0, 1, 1], [], []>} : vector<2x32xbf16>, vector<32x128xbf16>, vector<2x128xf32> -> vector<2x128xf32>
    %17 = arith.addf %13, %16 : vector<2x128xf32>
    %18 = vector.extract_strided_slice %17 {offsets = [0, 0], sizes = [2, 32], strides = [1, 1]} : vector<2x128xf32> to vector<2x32xf32>
    %cst_15 = arith.constant 5.000000e-01 : f32
    %19 = vector.broadcast %cst_15 : f32 to vector<2x32xf32>
    %20 = arith.mulf %19, %18 : vector<2x32xf32>
    %21 = math.tanh %20 : vector<2x32xf32>
    %cst_16 = arith.constant 1.000000e+00 : f32
    %22 = vector.broadcast %cst_16 : f32 to vector<2x32xf32>
    %23 = arith.addf %21, %22 : vector<2x32xf32>
    %cst_17 = arith.constant 5.000000e-01 : f32
    %24 = vector.broadcast %cst_17 : f32 to vector<2x32xf32>
    %25 = arith.mulf %24, %23 : vector<2x32xf32>
    %26 = vector.extract_strided_slice %17 {offsets = [0, 32], sizes = [2, 32], strides = [1, 1]} : vector<2x128xf32> to vector<2x32xf32>
    %cst_18 = arith.constant 5.000000e-01 : f32
    %27 = vector.broadcast %cst_18 : f32 to vector<2x32xf32>
    %28 = arith.mulf %27, %26 : vector<2x32xf32>
    %29 = math.tanh %28 : vector<2x32xf32>
    %cst_19 = arith.constant 1.000000e+00 : f32
    %30 = vector.broadcast %cst_19 : f32 to vector<2x32xf32>
    %31 = arith.addf %29, %30 : vector<2x32xf32>
    %cst_20 = arith.constant 5.000000e-01 : f32
    %32 = vector.broadcast %cst_20 : f32 to vector<2x32xf32>
    %33 = arith.mulf %32, %31 : vector<2x32xf32>
    %34 = vector.extract_strided_slice %17 {offsets = [0, 64], sizes = [2, 32], strides = [1, 1]} : vector<2x128xf32> to vector<2x32xf32>
    %35 = math.tanh %34 : vector<2x32xf32>
    %36 = vector.extract_strided_slice %17 {offsets = [0, 96], sizes = [2, 32], strides = [1, 1]} : vector<2x128xf32> to vector<2x32xf32>
    %cst_21 = arith.constant 5.000000e-01 : f32
    %37 = vector.broadcast %cst_21 : f32 to vector<2x32xf32>
    %38 = arith.mulf %37, %36 : vector<2x32xf32>
    %39 = math.tanh %38 : vector<2x32xf32>
    %cst_22 = arith.constant 1.000000e+00 : f32
    %40 = vector.broadcast %cst_22 : f32 to vector<2x32xf32>
    %41 = arith.addf %39, %40 : vector<2x32xf32>
    %cst_23 = arith.constant 5.000000e-01 : f32
    %42 = vector.broadcast %cst_23 : f32 to vector<2x32xf32>
    %43 = arith.mulf %42, %41 : vector<2x32xf32>
    %44 = arith.mulf %33, %12 : vector<2x32xf32>
    %45 = arith.mulf %25, %35 : vector<2x32xf32>
    %46 = arith.addf %44, %45 : vector<2x32xf32>
    %47 = math.tanh %46 : vector<2x32xf32>
    %48 = arith.mulf %43, %47 : vector<2x32xf32>
    %49 = arith.truncf %48 : vector<2x32xf32> to vector<2x32xbf16>
    %c0_24 = arith.constant 0 : index
    %c0_25 = arith.constant 0 : index
    %50 = vector.load %arg20[%c0_24, %c0_25] : memref<16x32xbf16, #tpu.memory_space<vmem>>, vector<2x32xbf16>
    tpu.vector_store %arg20[%c0_24, %c0_25], %49 {strides = array<i32>} : memref<16x32xbf16, #tpu.memory_space<vmem>>, vector<2x32xbf16>,
    %51 = vector.extract_strided_slice %8 {offsets = [2, 0], sizes = [2, 128], strides = [1, 1]} : vector<16x128xf32> to vector<2x128xf32>
    %52 = arith.truncf %48 : vector<2x32xf32> to vector<2x32xbf16>
    %c0_26 = arith.constant 0 : index
    %c0_27 = arith.constant 0 : index
    %53 = vector.load %arg4[%c0_26, %c0_27] : memref<32x128xbf16, #tpu.memory_space<vmem>>, vector<32x128xbf16>
    %cst_28 = arith.constant dense<0.000000e+00> : vector<2x128xf32>
    %54 = tpu.matmul %52, %53, %cst_28 {dimension_numbers = #tpu.dot_dimension_numbers<[1], [0], [0], [1], [0, 0, 1, 1], [], []>} : vector<2x32xbf16>, vector<32x128xbf16>, vector<2x128xf32> -> vector<2x128xf32>
    %55 = arith.addf %51, %54 : vector<2x128xf32>
    %56 = vector.extract_strided_slice %55 {offsets = [0, 0], sizes = [2, 32], strides = [1, 1]} : vector<2x128xf32> to vector<2x32xf32>
    %cst_29 = arith.constant 5.000000e-01 : f32
    %57 = vector.broadcast %cst_29 : f32 to vector<2x32xf32>
    %58 = arith.mulf %57, %56 : vector<2x32xf32>
    %59 = math.tanh %58 : vector<2x32xf32>
    %cst_30 = arith.constant 1.000000e+00 : f32
    %60 = vector.broadcast %cst_30 : f32 to vector<2x32xf32>
    %61 = arith.addf %59, %60 : vector<2x32xf32>
    %cst_31 = arith.constant 5.000000e-01 : f32
    %62 = vector.broadcast %cst_31 : f32 to vector<2x32xf32>
    %63 = arith.mulf %62, %61 : vector<2x32xf32>
    %64 = vector.extract_strided_slice %55 {offsets = [0, 32], sizes = [2, 32], strides = [1, 1]} : vector<2x128xf32> to vector<2x32xf32>
    %cst_32 = arith.constant 5.000000e-01 : f32
    %65 = vector.broadcast %cst_32 : f32 to vector<2x32xf32>
    %66 = arith.mulf %65, %64 : vector<2x32xf32>
    %67 = math.tanh %66 : vector<2x32xf32>
    %cst_33 = arith.constant 1.000000e+00 : f32
    %68 = vector.broadcast %cst_33 : f32 to vector<2x32xf32>
    %69 = arith.addf %67, %68 : vector<2x32xf32>
    %cst_34 = arith.constant 5.000000e-01 : f32
    %70 = vector.broadcast %cst_34 : f32 to vector<2x32xf32>
    %71 = arith.mulf %70, %69 : vector<2x32xf32>
    %72 = vector.extract_strided_slice %55 {offsets = [0, 64], sizes = [2, 32], strides = [1, 1]} : vector<2x128xf32> to vector<2x32xf32>
    %73 = math.tanh %72 : vector<2x32xf32>
    %74 = vector.extract_strided_slice %55 {offsets = [0, 96], sizes = [2, 32], strides = [1, 1]} : vector<2x128xf32> to vector<2x32xf32>
    %cst_35 = arith.constant 5.000000e-01 : f32
    %75 = vector.broadcast %cst_35 : f32 to vector<2x32xf32>
    %76 = arith.mulf %75, %74 : vector<2x32xf32>
    %77 = math.tanh %76 : vector<2x32xf32>
    %cst_36 = arith.constant 1.000000e+00 : f32
    %78 = vector.broadcast %cst_36 : f32 to vector<2x32xf32>
    %79 = arith.addf %77, %78 : vector<2x32xf32>
    %cst_37 = arith.constant 5.000000e-01 : f32
    %80 = vector.broadcast %cst_37 : f32 to vector<2x32xf32>
    %81 = arith.mulf %80, %79 : vector<2x32xf32>
    %82 = arith.mulf %71, %46 : vector<2x32xf32>
    %83 = arith.mulf %63, %73 : vector<2x32xf32>
    %84 = arith.addf %82, %83 : vector<2x32xf32>
    %85 = math.tanh %84 : vector<2x32xf32>
    %86 = arith.mulf %81, %85 : vector<2x32xf32>
    %87 = arith.truncf %86 : vector<2x32xf32> to vector<2x32xbf16>
    %c2 = arith.constant 2 : index
    %c0_38 = arith.constant 0 : index
    %88 = vector.load %arg20[%c2, %c0_38] : memref<16x32xbf16, #tpu.memory_space<vmem>>, vector<2x32xbf16>
    tpu.vector_store %arg20[%c2, %c0_38], %87 {strides = array<i32>} : memref<16x32xbf16, #tpu.memory_space<vmem>>, vector<2x32xbf16>,
    %89 = vector.extract_strided_slice %8 {offsets = [4, 0], sizes = [2, 128], strides = [1, 1]} : vector<16x128xf32> to vector<2x128xf32>
    %90 = arith.truncf %86 : vector<2x32xf32> to vector<2x32xbf16>
    %c0_39 = arith.constant 0 : index
    %c0_40 = arith.constant 0 : index
    %91 = vector.load %arg4[%c0_39, %c0_40] : memref<32x128xbf16, #tpu.memory_space<vmem>>, vector<32x128xbf16>
    %cst_41 = arith.constant dense<0.000000e+00> : vector<2x128xf32>
    %92 = tpu.matmul %90, %91, %cst_41 {dimension_numbers = #tpu.dot_dimension_numbers<[1], [0], [0], [1], [0, 0, 1, 1], [], []>} : vector<2x32xbf16>, vector<32x128xbf16>, vector<2x128xf32> -> vector<2x128xf32>
    %93 = arith.addf %89, %92 : vector<2x128xf32>
    %94 = vector.extract_strided_slice %93 {offsets = [0, 0], sizes = [2, 32], strides = [1, 1]} : vector<2x128xf32> to vector<2x32xf32>
    %cst_42 = arith.constant 5.000000e-01 : f32
    %95 = vector.broadcast %cst_42 : f32 to vector<2x32xf32>
    %96 = arith.mulf %95, %94 : vector<2x32xf32>
    %97 = math.tanh %96 : vector<2x32xf32>
    %cst_43 = arith.constant 1.000000e+00 : f32
    %98 = vector.broadcast %cst_43 : f32 to vector<2x32xf32>
    %99 = arith.addf %97, %98 : vector<2x32xf32>
    %cst_44 = arith.constant 5.000000e-01 : f32
    %100 = vector.broadcast %cst_44 : f32 to vector<2x32xf32>
    %101 = arith.mulf %100, %99 : vector<2x32xf32>
    %102 = vector.extract_strided_slice %93 {offsets = [0, 32], sizes = [2, 32], strides = [1, 1]} : vector<2x128xf32> to vector<2x32xf32>
    %cst_45 = arith.constant 5.000000e-01 : f32
    %103 = vector.broadcast %cst_45 : f32 to vector<2x32xf32>
    %104 = arith.mulf %103, %102 : vector<2x32xf32>
    %105 = math.tanh %104 : vector<2x32xf32>
    %cst_46 = arith.constant 1.000000e+00 : f32
    %106 = vector.broadcast %cst_46 : f32 to vector<2x32xf32>
    %107 = arith.addf %105, %106 : vector<2x32xf32>
    %cst_47 = arith.constant 5.000000e-01 : f32
    %108 = vector.broadcast %cst_47 : f32 to vector<2x32xf32>
    %109 = arith.mulf %108, %107 : vector<2x32xf32>
    %110 = vector.extract_strided_slice %93 {offsets = [0, 64], sizes = [2, 32], strides = [1, 1]} : vector<2x128xf32> to vector<2x32xf32>
    %111 = math.tanh %110 : vector<2x32xf32>
    %112 = vector.extract_strided_slice %93 {offsets = [0, 96], sizes = [2, 32], strides = [1, 1]} : vector<2x128xf32> to vector<2x32xf32>
    %cst_48 = arith.constant 5.000000e-01 : f32
    %113 = vector.broadcast %cst_48 : f32 to vector<2x32xf32>
    %114 = arith.mulf %113, %112 : vector<2x32xf32>
    %115 = math.tanh %114 : vector<2x32xf32>
    %cst_49 = arith.constant 1.000000e+00 : f32
    %116 = vector.broadcast %cst_49 : f32 to vector<2x32xf32>
    %117 = arith.addf %115, %116 : vector<2x32xf32>
    %cst_50 = arith.constant 5.000000e-01 : f32
    %118 = vector.broadcast %cst_50 : f32 to vector<2x32xf32>
    %119 = arith.mulf %118, %117 : vector<2x32xf32>
    %120 = arith.mulf %109, %84 : vector<2x32xf32>
    %121 = arith.mulf %101, %111 : vector<2x32xf32>
    %122 = arith.addf %120, %121 : vector<2x32xf32>
    %123 = math.tanh %122 : vector<2x32xf32>
    %124 = arith.mulf %119, %123 : vector<2x32xf32>
    %125 = arith.truncf %124 : vector<2x32xf32> to vector<2x32xbf16>
    %c4 = arith.constant 4 : index
    %c0_51 = arith.constant 0 : index
    %126 = vector.load %arg20[%c4, %c0_51] : memref<16x32xbf16, #tpu.memory_space<vmem>>, vector<2x32xbf16>
    tpu.vector_store %arg20[%c4, %c0_51], %125 {strides = array<i32>} : memref<16x32xbf16, #tpu.memory_space<vmem>>, vector<2x32xbf16>,
    %127 = vector.extract_strided_slice %8 {offsets = [6, 0], sizes = [2, 128], strides = [1, 1]} : vector<16x128xf32> to vector<2x128xf32>
    %128 = arith.truncf %124 : vector<2x32xf32> to vector<2x32xbf16>
    %c0_52 = arith.constant 0 : index
    %c0_53 = arith.constant 0 : index
    %129 = vector.load %arg4[%c0_52, %c0_53] : memref<32x128xbf16, #tpu.memory_space<vmem>>, vector<32x128xbf16>
    %cst_54 = arith.constant dense<0.000000e+00> : vector<2x128xf32>
    %130 = tpu.matmul %128, %129, %cst_54 {dimension_numbers = #tpu.dot_dimension_numbers<[1], [0], [0], [1], [0, 0, 1, 1], [], []>} : vector<2x32xbf16>, vector<32x128xbf16>, vector<2x128xf32> -> vector<2x128xf32>
    %131 = arith.addf %127, %130 : vector<2x128xf32>
    %132 = vector.extract_strided_slice %131 {offsets = [0, 0], sizes = [2, 32], strides = [1, 1]} : vector<2x128xf32> to vector<2x32xf32>
    %cst_55 = arith.constant 5.000000e-01 : f32
    %133 = vector.broadcast %cst_55 : f32 to vector<2x32xf32>
    %134 = arith.mulf %133, %132 : vector<2x32xf32>
    %135 = math.tanh %134 : vector<2x32xf32>
    %cst_56 = arith.constant 1.000000e+00 : f32
    %136 = vector.broadcast %cst_56 : f32 to vector<2x32xf32>
    %137 = arith.addf %135, %136 : vector<2x32xf32>
    %cst_57 = arith.constant 5.000000e-01 : f32
    %138 = vector.broadcast %cst_57 : f32 to vector<2x32xf32>
    %139 = arith.mulf %138, %137 : vector<2x32xf32>
    %140 = vector.extract_strided_slice %131 {offsets = [0, 32], sizes = [2, 32], strides = [1, 1]} : vector<2x128xf32> to vector<2x32xf32>
    %cst_58 = arith.constant 5.000000e-01 : f32
    %141 = vector.broadcast %cst_58 : f32 to vector<2x32xf32>
    %142 = arith.mulf %141, %140 : vector<2x32xf32>
    %143 = math.tanh %142 : vector<2x32xf32>
    %cst_59 = arith.constant 1.000000e+00 : f32
    %144 = vector.broadcast %cst_59 : f32 to vector<2x32xf32>
    %145 = arith.addf %143, %144 : vector<2x32xf32>
    %cst_60 = arith.constant 5.000000e-01 : f32
    %146 = vector.broadcast %cst_60 : f32 to vector<2x32xf32>
    %147 = arith.mulf %146, %145 : vector<2x32xf32>
    %148 = vector.extract_strided_slice %131 {offsets = [0, 64], sizes = [2, 32], strides = [1, 1]} : vector<2x128xf32> to vector<2x32xf32>
    %149 = math.tanh %148 : vector<2x32xf32>
    %150 = vector.extract_strided_slice %131 {offsets = [0, 96], sizes = [2, 32], strides = [1, 1]} : vector<2x128xf32> to vector<2x32xf32>
    %cst_61 = arith.constant 5.000000e-01 : f32
    %151 = vector.broadcast %cst_61 : f32 to vector<2x32xf32>
    %152 = arith.mulf %151, %150 : vector<2x32xf32>
    %153 = math.tanh %152 : vector<2x32xf32>
    %cst_62 = arith.constant 1.000000e+00 : f32
    %154 = vector.broadcast %cst_62 : f32 to vector<2x32xf32>
    %155 = arith.addf %153, %154 : vector<2x32xf32>
    %cst_63 = arith.constant 5.000000e-01 : f32
    %156 = vector.broadcast %cst_63 : f32 to vector<2x32xf32>
    %157 = arith.mulf %156, %155 : vector<2x32xf32>
    %158 = arith.mulf %147, %122 : vector<2x32xf32>
    %159 = arith.mulf %139, %149 : vector<2x32xf32>
    %160 = arith.addf %158, %159 : vector<2x32xf32>
    %161 = math.tanh %160 : vector<2x32xf32>
    %162 = arith.mulf %157, %161 : vector<2x32xf32>
    %163 = arith.truncf %162 : vector<2x32xf32> to vector<2x32xbf16>
    %c6 = arith.constant 6 : index
    %c0_64 = arith.constant 0 : index
    %164 = vector.load %arg20[%c6, %c0_64] : memref<16x32xbf16, #tpu.memory_space<vmem>>, vector<2x32xbf16>
    tpu.vector_store %arg20[%c6, %c0_64], %163 {strides = array<i32>} : memref<16x32xbf16, #tpu.memory_space<vmem>>, vector<2x32xbf16>,
    %165 = vector.extract_strided_slice %8 {offsets = [8, 0], sizes = [2, 128], strides = [1, 1]} : vector<16x128xf32> to vector<2x128xf32>
    %166 = arith.truncf %162 : vector<2x32xf32> to vector<2x32xbf16>
    %c0_65 = arith.constant 0 : index
    %c0_66 = arith.constant 0 : index
    %167 = vector.load %arg4[%c0_65, %c0_66] : memref<32x128xbf16, #tpu.memory_space<vmem>>, vector<32x128xbf16>
    %cst_67 = arith.constant dense<0.000000e+00> : vector<2x128xf32>
    %168 = tpu.matmul %166, %167, %cst_67 {dimension_numbers = #tpu.dot_dimension_numbers<[1], [0], [0], [1], [0, 0, 1, 1], [], []>} : vector<2x32xbf16>, vector<32x128xbf16>, vector<2x128xf32> -> vector<2x128xf32>
    %169 = arith.addf %165, %168 : vector<2x128xf32>
    %170 = vector.extract_strided_slice %169 {offsets = [0, 0], sizes = [2, 32], strides = [1, 1]} : vector<2x128xf32> to vector<2x32xf32>
    %cst_68 = arith.constant 5.000000e-01 : f32
    %171 = vector.broadcast %cst_68 : f32 to vector<2x32xf32>
    %172 = arith.mulf %171, %170 : vector<2x32xf32>
    %173 = math.tanh %172 : vector<2x32xf32>
    %cst_69 = arith.constant 1.000000e+00 : f32
    %174 = vector.broadcast %cst_69 : f32 to vector<2x32xf32>
    %175 = arith.addf %173, %174 : vector<2x32xf32>
    %cst_70 = arith.constant 5.000000e-01 : f32
    %176 = vector.broadcast %cst_70 : f32 to vector<2x32xf32>
    %177 = arith.mulf %176, %175 : vector<2x32xf32>
    %178 = vector.extract_strided_slice %169 {offsets = [0, 32], sizes = [2, 32], strides = [1, 1]} : vector<2x128xf32> to vector<2x32xf32>
    %cst_71 = arith.constant 5.000000e-01 : f32
    %179 = vector.broadcast %cst_71 : f32 to vector<2x32xf32>
    %180 = arith.mulf %179, %178 : vector<2x32xf32>
    %181 = math.tanh %180 : vector<2x32xf32>
    %cst_72 = arith.constant 1.000000e+00 : f32
    %182 = vector.broadcast %cst_72 : f32 to vector<2x32xf32>
    %183 = arith.addf %181, %182 : vector<2x32xf32>
    %cst_73 = arith.constant 5.000000e-01 : f32
    %184 = vector.broadcast %cst_73 : f32 to vector<2x32xf32>
    %185 = arith.mulf %184, %183 : vector<2x32xf32>
    %186 = vector.extract_strided_slice %169 {offsets = [0, 64], sizes = [2, 32], strides = [1, 1]} : vector<2x128xf32> to vector<2x32xf32>
    %187 = math.tanh %186 : vector<2x32xf32>
    %188 = vector.extract_strided_slice %169 {offsets = [0, 96], sizes = [2, 32], strides = [1, 1]} : vector<2x128xf32> to vector<2x32xf32>
    %cst_74 = arith.constant 5.000000e-01 : f32
    %189 = vector.broadcast %cst_74 : f32 to vector<2x32xf32>
    %190 = arith.mulf %189, %188 : vector<2x32xf32>
    %191 = math.tanh %190 : vector<2x32xf32>
    %cst_75 = arith.constant 1.000000e+00 : f32
    %192 = vector.broadcast %cst_75 : f32 to vector<2x32xf32>
    %193 = arith.addf %191, %192 : vector<2x32xf32>
    %cst_76 = arith.constant 5.000000e-01 : f32
    %194 = vector.broadcast %cst_76 : f32 to vector<2x32xf32>
    %195 = arith.mulf %194, %193 : vector<2x32xf32>
    %196 = arith.mulf %185, %160 : vector<2x32xf32>
    %197 = arith.mulf %177, %187 : vector<2x32xf32>
    %198 = arith.addf %196, %197 : vector<2x32xf32>
    %199 = math.tanh %198 : vector<2x32xf32>
    %200 = arith.mulf %195, %199 : vector<2x32xf32>
    %201 = arith.truncf %200 : vector<2x32xf32> to vector<2x32xbf16>
    %c8 = arith.constant 8 : index
    %c0_77 = arith.constant 0 : index
    %202 = vector.load %arg20[%c8, %c0_77] : memref<16x32xbf16, #tpu.memory_space<vmem>>, vector<2x32xbf16>
    tpu.vector_store %arg20[%c8, %c0_77], %201 {strides = array<i32>} : memref<16x32xbf16, #tpu.memory_space<vmem>>, vector<2x32xbf16>,
    %203 = vector.extract_strided_slice %8 {offsets = [10, 0], sizes = [2, 128], strides = [1, 1]} : vector<16x128xf32> to vector<2x128xf32>
    %204 = arith.truncf %200 : vector<2x32xf32> to vector<2x32xbf16>
    %c0_78 = arith.constant 0 : index
    %c0_79 = arith.constant 0 : index
    %205 = vector.load %arg4[%c0_78, %c0_79] : memref<32x128xbf16, #tpu.memory_space<vmem>>, vector<32x128xbf16>
    %cst_80 = arith.constant dense<0.000000e+00> : vector<2x128xf32>
    %206 = tpu.matmul %204, %205, %cst_80 {dimension_numbers = #tpu.dot_dimension_numbers<[1], [0], [0], [1], [0, 0, 1, 1], [], []>} : vector<2x32xbf16>, vector<32x128xbf16>, vector<2x128xf32> -> vector<2x128xf32>
    %207 = arith.addf %203, %206 : vector<2x128xf32>
    %208 = vector.extract_strided_slice %207 {offsets = [0, 0], sizes = [2, 32], strides = [1, 1]} : vector<2x128xf32> to vector<2x32xf32>
    %cst_81 = arith.constant 5.000000e-01 : f32
    %209 = vector.broadcast %cst_81 : f32 to vector<2x32xf32>
    %210 = arith.mulf %209, %208 : vector<2x32xf32>
    %211 = math.tanh %210 : vector<2x32xf32>
    %cst_82 = arith.constant 1.000000e+00 : f32
    %212 = vector.broadcast %cst_82 : f32 to vector<2x32xf32>
    %213 = arith.addf %211, %212 : vector<2x32xf32>
    %cst_83 = arith.constant 5.000000e-01 : f32
    %214 = vector.broadcast %cst_83 : f32 to vector<2x32xf32>
    %215 = arith.mulf %214, %213 : vector<2x32xf32>
    %216 = vector.extract_strided_slice %207 {offsets = [0, 32], sizes = [2, 32], strides = [1, 1]} : vector<2x128xf32> to vector<2x32xf32>
    %cst_84 = arith.constant 5.000000e-01 : f32
    %217 = vector.broadcast %cst_84 : f32 to vector<2x32xf32>
    %218 = arith.mulf %217, %216 : vector<2x32xf32>
    %219 = math.tanh %218 : vector<2x32xf32>
    %cst_85 = arith.constant 1.000000e+00 : f32
    %220 = vector.broadcast %cst_85 : f32 to vector<2x32xf32>
    %221 = arith.addf %219, %220 : vector<2x32xf32>
    %cst_86 = arith.constant 5.000000e-01 : f32
    %222 = vector.broadcast %cst_86 : f32 to vector<2x32xf32>
    %223 = arith.mulf %222, %221 : vector<2x32xf32>
    %224 = vector.extract_strided_slice %207 {offsets = [0, 64], sizes = [2, 32], strides = [1, 1]} : vector<2x128xf32> to vector<2x32xf32>
    %225 = math.tanh %224 : vector<2x32xf32>
    %226 = vector.extract_strided_slice %207 {offsets = [0, 96], sizes = [2, 32], strides = [1, 1]} : vector<2x128xf32> to vector<2x32xf32>
    %cst_87 = arith.constant 5.000000e-01 : f32
    %227 = vector.broadcast %cst_87 : f32 to vector<2x32xf32>
    %228 = arith.mulf %227, %226 : vector<2x32xf32>
    %229 = math.tanh %228 : vector<2x32xf32>
    %cst_88 = arith.constant 1.000000e+00 : f32
    %230 = vector.broadcast %cst_88 : f32 to vector<2x32xf32>
    %231 = arith.addf %229, %230 : vector<2x32xf32>
    %cst_89 = arith.constant 5.000000e-01 : f32
    %232 = vector.broadcast %cst_89 : f32 to vector<2x32xf32>
    %233 = arith.mulf %232, %231 : vector<2x32xf32>
    %234 = arith.mulf %223, %198 : vector<2x32xf32>
    %235 = arith.mulf %215, %225 : vector<2x32xf32>
    %236 = arith.addf %234, %235 : vector<2x32xf32>
    %237 = math.tanh %236 : vector<2x32xf32>
    %238 = arith.mulf %233, %237 : vector<2x32xf32>
    %239 = arith.truncf %238 : vector<2x32xf32> to vector<2x32xbf16>
    %c10 = arith.constant 10 : index
    %c0_90 = arith.constant 0 : index
    %240 = vector.load %arg20[%c10, %c0_90] : memref<16x32xbf16, #tpu.memory_space<vmem>>, vector<2x32xbf16>
    tpu.vector_store %arg20[%c10, %c0_90], %239 {strides = array<i32>} : memref<16x32xbf16, #tpu.memory_space<vmem>>, vector<2x32xbf16>,
    %241 = vector.extract_strided_slice %8 {offsets = [12, 0], sizes = [2, 128], strides = [1, 1]} : vector<16x128xf32> to vector<2x128xf32>
    %242 = arith.truncf %238 : vector<2x32xf32> to vector<2x32xbf16>
    %c0_91 = arith.constant 0 : index
    %c0_92 = arith.constant 0 : index
    %243 = vector.load %arg4[%c0_91, %c0_92] : memref<32x128xbf16, #tpu.memory_space<vmem>>, vector<32x128xbf16>
    %cst_93 = arith.constant dense<0.000000e+00> : vector<2x128xf32>
    %244 = tpu.matmul %242, %243, %cst_93 {dimension_numbers = #tpu.dot_dimension_numbers<[1], [0], [0], [1], [0, 0, 1, 1], [], []>} : vector<2x32xbf16>, vector<32x128xbf16>, vector<2x128xf32> -> vector<2x128xf32>
    %245 = arith.addf %241, %244 : vector<2x128xf32>
    %246 = vector.extract_strided_slice %245 {offsets = [0, 0], sizes = [2, 32], strides = [1, 1]} : vector<2x128xf32> to vector<2x32xf32>
    %cst_94 = arith.constant 5.000000e-01 : f32
    %247 = vector.broadcast %cst_94 : f32 to vector<2x32xf32>
    %248 = arith.mulf %247, %246 : vector<2x32xf32>
    %249 = math.tanh %248 : vector<2x32xf32>
    %cst_95 = arith.constant 1.000000e+00 : f32
    %250 = vector.broadcast %cst_95 : f32 to vector<2x32xf32>
    %251 = arith.addf %249, %250 : vector<2x32xf32>
    %cst_96 = arith.constant 5.000000e-01 : f32
    %252 = vector.broadcast %cst_96 : f32 to vector<2x32xf32>
    %253 = arith.mulf %252, %251 : vector<2x32xf32>
    %254 = vector.extract_strided_slice %245 {offsets = [0, 32], sizes = [2, 32], strides = [1, 1]} : vector<2x128xf32> to vector<2x32xf32>
    %cst_97 = arith.constant 5.000000e-01 : f32
    %255 = vector.broadcast %cst_97 : f32 to vector<2x32xf32>
    %256 = arith.mulf %255, %254 : vector<2x32xf32>
    %257 = math.tanh %256 : vector<2x32xf32>
    %cst_98 = arith.constant 1.000000e+00 : f32
    %258 = vector.broadcast %cst_98 : f32 to vector<2x32xf32>
    %259 = arith.addf %257, %258 : vector<2x32xf32>
    %cst_99 = arith.constant 5.000000e-01 : f32
    %260 = vector.broadcast %cst_99 : f32 to vector<2x32xf32>
    %261 = arith.mulf %260, %259 : vector<2x32xf32>
    %262 = vector.extract_strided_slice %245 {offsets = [0, 64], sizes = [2, 32], strides = [1, 1]} : vector<2x128xf32> to vector<2x32xf32>
    %263 = math.tanh %262 : vector<2x32xf32>
    %264 = vector.extract_strided_slice %245 {offsets = [0, 96], sizes = [2, 32], strides = [1, 1]} : vector<2x128xf32> to vector<2x32xf32>
    %cst_100 = arith.constant 5.000000e-01 : f32
    %265 = vector.broadcast %cst_100 : f32 to vector<2x32xf32>
    %266 = arith.mulf %265, %264 : vector<2x32xf32>
    %267 = math.tanh %266 : vector<2x32xf32>
    %cst_101 = arith.constant 1.000000e+00 : f32
    %268 = vector.broadcast %cst_101 : f32 to vector<2x32xf32>
    %269 = arith.addf %267, %268 : vector<2x32xf32>
    %cst_102 = arith.constant 5.000000e-01 : f32
    %270 = vector.broadcast %cst_102 : f32 to vector<2x32xf32>
    %271 = arith.mulf %270, %269 : vector<2x32xf32>
    %272 = arith.mulf %261, %236 : vector<2x32xf32>
    %273 = arith.mulf %253, %263 : vector<2x32xf32>
    %274 = arith.addf %272, %273 : vector<2x32xf32>
    %275 = math.tanh %274 : vector<2x32xf32>
    %276 = arith.mulf %271, %275 : vector<2x32xf32>
    %277 = arith.truncf %276 : vector<2x32xf32> to vector<2x32xbf16>
    %c12 = arith.constant 12 : index
    %c0_103 = arith.constant 0 : index
    %278 = vector.load %arg20[%c12, %c0_103] : memref<16x32xbf16, #tpu.memory_space<vmem>>, vector<2x32xbf16>
    tpu.vector_store %arg20[%c12, %c0_103], %277 {strides = array<i32>} : memref<16x32xbf16, #tpu.memory_space<vmem>>, vector<2x32xbf16>,
    %279 = vector.extract_strided_slice %8 {offsets = [14, 0], sizes = [2, 128], strides = [1, 1]} : vector<16x128xf32> to vector<2x128xf32>
    %280 = arith.truncf %276 : vector<2x32xf32> to vector<2x32xbf16>
    %c0_104 = arith.constant 0 : index
    %c0_105 = arith.constant 0 : index
    %281 = vector.load %arg4[%c0_104, %c0_105] : memref<32x128xbf16, #tpu.memory_space<vmem>>, vector<32x128xbf16>
    %cst_106 = arith.constant dense<0.000000e+00> : vector<2x128xf32>
    %282 = tpu.matmul %280, %281, %cst_106 {dimension_numbers = #tpu.dot_dimension_numbers<[1], [0], [0], [1], [0, 0, 1, 1], [], []>} : vector<2x32xbf16>, vector<32x128xbf16>, vector<2x128xf32> -> vector<2x128xf32>
    %283 = arith.addf %279, %282 : vector<2x128xf32>
    %284 = vector.extract_strided_slice %283 {offsets = [0, 0], sizes = [2, 32], strides = [1, 1]} : vector<2x128xf32> to vector<2x32xf32>
    %cst_107 = arith.constant 5.000000e-01 : f32
    %285 = vector.broadcast %cst_107 : f32 to vector<2x32xf32>
    %286 = arith.mulf %285, %284 : vector<2x32xf32>
    %287 = math.tanh %286 : vector<2x32xf32>
    %cst_108 = arith.constant 1.000000e+00 : f32
    %288 = vector.broadcast %cst_108 : f32 to vector<2x32xf32>
    %289 = arith.addf %287, %288 : vector<2x32xf32>
    %cst_109 = arith.constant 5.000000e-01 : f32
    %290 = vector.broadcast %cst_109 : f32 to vector<2x32xf32>
    %291 = arith.mulf %290, %289 : vector<2x32xf32>
    %292 = vector.extract_strided_slice %283 {offsets = [0, 32], sizes = [2, 32], strides = [1, 1]} : vector<2x128xf32> to vector<2x32xf32>
    %cst_110 = arith.constant 5.000000e-01 : f32
    %293 = vector.broadcast %cst_110 : f32 to vector<2x32xf32>
    %294 = arith.mulf %293, %292 : vector<2x32xf32>
    %295 = math.tanh %294 : vector<2x32xf32>
    %cst_111 = arith.constant 1.000000e+00 : f32
    %296 = vector.broadcast %cst_111 : f32 to vector<2x32xf32>
    %297 = arith.addf %295, %296 : vector<2x32xf32>
    %cst_112 = arith.constant 5.000000e-01 : f32
    %298 = vector.broadcast %cst_112 : f32 to vector<2x32xf32>
    %299 = arith.mulf %298, %297 : vector<2x32xf32>
    %300 = vector.extract_strided_slice %283 {offsets = [0, 64], sizes = [2, 32], strides = [1, 1]} : vector<2x128xf32> to vector<2x32xf32>
    %301 = math.tanh %300 : vector<2x32xf32>
    %302 = vector.extract_strided_slice %283 {offsets = [0, 96], sizes = [2, 32], strides = [1, 1]} : vector<2x128xf32> to vector<2x32xf32>
    %cst_113 = arith.constant 5.000000e-01 : f32
    %303 = vector.broadcast %cst_113 : f32 to vector<2x32xf32>
    %304 = arith.mulf %303, %302 : vector<2x32xf32>
    %305 = math.tanh %304 : vector<2x32xf32>
    %cst_114 = arith.constant 1.000000e+00 : f32
    %306 = vector.broadcast %cst_114 : f32 to vector<2x32xf32>
    %307 = arith.addf %305, %306 : vector<2x32xf32>
    %cst_115 = arith.constant 5.000000e-01 : f32
    %308 = vector.broadcast %cst_115 : f32 to vector<2x32xf32>
    %309 = arith.mulf %308, %307 : vector<2x32xf32>
    %310 = arith.mulf %299, %274 : vector<2x32xf32>
    %311 = arith.mulf %291, %301 : vector<2x32xf32>
    %312 = arith.addf %310, %311 : vector<2x32xf32>
    %313 = math.tanh %312 : vector<2x32xf32>
    %314 = arith.mulf %309, %313 : vector<2x32xf32>
    %315 = arith.truncf %314 : vector<2x32xf32> to vector<2x32xbf16>
    %c14 = arith.constant 14 : index
    %c0_116 = arith.constant 0 : index
    %316 = vector.load %arg20[%c14, %c0_116] : memref<16x32xbf16, #tpu.memory_space<vmem>>, vector<2x32xbf16>
    tpu.vector_store %arg20[%c14, %c0_116], %315 {strides = array<i32>} : memref<16x32xbf16, #tpu.memory_space<vmem>>, vector<2x32xbf16>,
    %c0_117 = arith.constant 0 : index
    %c0_118 = arith.constant 0 : index
    %c0_119 = arith.constant 0 : index
    %317 = vector.load %arg18[%c0_117, %c0_118, %c0_119] : memref<2x2x32xf32, #tpu.memory_space<vmem>>, vector<1x2x32xf32>
    %318 = vector.shape_cast %317 : vector<1x2x32xf32> to vector<2x32xf32>
    %319 = vector.shape_cast %314 : vector<2x32xf32> to vector<1x2x32xf32>
    tpu.vector_store %arg18[%c0_117, %c0_118, %c0_119], %319 {strides = array<i32>} : memref<2x2x32xf32, #tpu.memory_space<vmem>>, vector<1x2x32xf32>,
    %c0_120 = arith.constant 0 : index
    %c0_121 = arith.constant 0 : index
    %c0_122 = arith.constant 0 : index
    %320 = vector.load %arg19[%c0_120, %c0_121, %c0_122] : memref<2x2x32xf32, #tpu.memory_space<vmem>>, vector<1x2x32xf32>
    %321 = vector.shape_cast %320 : vector<1x2x32xf32> to vector<2x32xf32>
    %322 = vector.shape_cast %312 : vector<2x32xf32> to vector<1x2x32xf32>
    tpu.vector_store %arg19[%c0_120, %c0_121, %c0_122], %322 {strides = array<i32>} : memref<2x2x32xf32, #tpu.memory_space<vmem>>, vector<1x2x32xf32>,
    %c0_123 = arith.constant 0 : index
    %c0_124 = arith.constant 0 : index
    %323 = vector.load %arg20[%c0_123, %c0_124] : memref<16x32xbf16, #tpu.memory_space<vmem>>, vector<16x32xbf16>
    %c0_125 = arith.constant 0 : index
    %c0_126 = arith.constant 0 : index
    %324 = vector.load %arg10[%c0_125, %c0_126] : memref<32x128xbf16, #tpu.memory_space<vmem>>, vector<32x128xbf16>
    %cst_127 = arith.constant dense<0.000000e+00> : vector<16x128xf32>
    %325 = tpu.matmul %323, %324, %cst_127 {dimension_numbers = #tpu.dot_dimension_numbers<[1], [0], [0], [1], [0, 0, 1, 1], [], []>} : vector<16x32xbf16>, vector<32x128xbf16>, vector<16x128xf32> -> vector<16x128xf32>
    %c0_128 = arith.constant 0 : index
    %c0_129 = arith.constant 0 : index
    %326 = vector.load %arg12[%c0_128, %c0_129] : memref<1x128xf32, #tpu.memory_space<vmem>>, vector<1x128xf32>
    %327 = vector.broadcast %326 : vector<1x128xf32> to vector<16x128xf32>
    %328 = arith.addf %325, %327 : vector<16x128xf32>
    %c1 = arith.constant 1 : index
    %c0_130 = arith.constant 0 : index
    %c0_131 = arith.constant 0 : index
    %329 = vector.load %arg18[%c1, %c0_130, %c0_131] : memref<2x2x32xf32, #tpu.memory_space<vmem>>, vector<1x2x32xf32>
    %330 = vector.shape_cast %329 : vector<1x2x32xf32> to vector<2x32xf32>
    %c1_132 = arith.constant 1 : index
    %c0_133 = arith.constant 0 : index
    %c0_134 = arith.constant 0 : index
    %331 = vector.load %arg19[%c1_132, %c0_133, %c0_134] : memref<2x2x32xf32, #tpu.memory_space<vmem>>, vector<1x2x32xf32>
    %332 = vector.shape_cast %331 : vector<1x2x32xf32> to vector<2x32xf32>
    %333 = vector.extract_strided_slice %328 {offsets = [0, 0], sizes = [2, 128], strides = [1, 1]} : vector<16x128xf32> to vector<2x128xf32>
    %334 = arith.truncf %330 : vector<2x32xf32> to vector<2x32xbf16>
    %c0_135 = arith.constant 0 : index
    %c0_136 = arith.constant 0 : index
    %335 = vector.load %arg11[%c0_135, %c0_136] : memref<32x128xbf16, #tpu.memory_space<vmem>>, vector<32x128xbf16>
    %cst_137 = arith.constant dense<0.000000e+00> : vector<2x128xf32>
    %336 = tpu.matmul %334, %335, %cst_137 {dimension_numbers = #tpu.dot_dimension_numbers<[1], [0], [0], [1], [0, 0, 1, 1], [], []>} : vector<2x32xbf16>, vector<32x128xbf16>, vector<2x128xf32> -> vector<2x128xf32>
    %337 = arith.addf %333, %336 : vector<2x128xf32>
    %338 = vector.extract_strided_slice %337 {offsets = [0, 0], sizes = [2, 32], strides = [1, 1]} : vector<2x128xf32> to vector<2x32xf32>
    %cst_138 = arith.constant 5.000000e-01 : f32
    %339 = vector.broadcast %cst_138 : f32 to vector<2x32xf32>
    %340 = arith.mulf %339, %338 : vector<2x32xf32>
    %341 = math.tanh %340 : vector<2x32xf32>
    %cst_139 = arith.constant 1.000000e+00 : f32
    %342 = vector.broadcast %cst_139 : f32 to vector<2x32xf32>
    %343 = arith.addf %341, %342 : vector<2x32xf32>
    %cst_140 = arith.constant 5.000000e-01 : f32
    %344 = vector.broadcast %cst_140 : f32 to vector<2x32xf32>
    %345 = arith.mulf %344, %343 : vector<2x32xf32>
    %346 = vector.extract_strided_slice %337 {offsets = [0, 32], sizes = [2, 32], strides = [1, 1]} : vector<2x128xf32> to vector<2x32xf32>
    %cst_141 = arith.constant 5.000000e-01 : f32
    %347 = vector.broadcast %cst_141 : f32 to vector<2x32xf32>
    %348 = arith.mulf %347, %346 : vector<2x32xf32>
    %349 = math.tanh %348 : vector<2x32xf32>
    %cst_142 = arith.constant 1.000000e+00 : f32
    %350 = vector.broadcast %cst_142 : f32 to vector<2x32xf32>
    %351 = arith.addf %349, %350 : vector<2x32xf32>
    %cst_143 = arith.constant 5.000000e-01 : f32
    %352 = vector.broadcast %cst_143 : f32 to vector<2x32xf32>
    %353 = arith.mulf %352, %351 : vector<2x32xf32>
    %354 = vector.extract_strided_slice %337 {offsets = [0, 64], sizes = [2, 32], strides = [1, 1]} : vector<2x128xf32> to vector<2x32xf32>
    %355 = math.tanh %354 : vector<2x32xf32>
    %356 = vector.extract_strided_slice %337 {offsets = [0, 96], sizes = [2, 32], strides = [1, 1]} : vector<2x128xf32> to vector<2x32xf32>
    %cst_144 = arith.constant 5.000000e-01 : f32
    %357 = vector.broadcast %cst_144 : f32 to vector<2x32xf32>
    %358 = arith.mulf %357, %356 : vector<2x32xf32>
    %359 = math.tanh %358 : vector<2x32xf32>
    %cst_145 = arith.constant 1.000000e+00 : f32
    %360 = vector.broadcast %cst_145 : f32 to vector<2x32xf32>
    %361 = arith.addf %359, %360 : vector<2x32xf32>
    %cst_146 = arith.constant 5.000000e-01 : f32
    %362 = vector.broadcast %cst_146 : f32 to vector<2x32xf32>
    %363 = arith.mulf %362, %361 : vector<2x32xf32>
    %364 = arith.mulf %353, %332 : vector<2x32xf32>
    %365 = arith.mulf %345, %355 : vector<2x32xf32>
    %366 = arith.addf %364, %365 : vector<2x32xf32>
    %367 = math.tanh %366 : vector<2x32xf32>
    %368 = arith.mulf %363, %367 : vector<2x32xf32>
    %369 = arith.truncf %368 : vector<2x32xf32> to vector<2x32xbf16>
    %c0_147 = arith.constant 0 : index
    %c0_148 = arith.constant 0 : index
    %370 = vector.load %arg17[%c0_147, %c0_148] : memref<16x32xbf16, #tpu.memory_space<vmem>>, vector<2x32xbf16>
    tpu.vector_store %arg17[%c0_147, %c0_148], %369 {strides = array<i32>} : memref<16x32xbf16, #tpu.memory_space<vmem>>, vector<2x32xbf16>,
    %371 = vector.extract_strided_slice %328 {offsets = [2, 0], sizes = [2, 128], strides = [1, 1]} : vector<16x128xf32> to vector<2x128xf32>
    %372 = arith.truncf %368 : vector<2x32xf32> to vector<2x32xbf16>
    %c0_149 = arith.constant 0 : index
    %c0_150 = arith.constant 0 : index
    %373 = vector.load %arg11[%c0_149, %c0_150] : memref<32x128xbf16, #tpu.memory_space<vmem>>, vector<32x128xbf16>
    %cst_151 = arith.constant dense<0.000000e+00> : vector<2x128xf32>
    %374 = tpu.matmul %372, %373, %cst_151 {dimension_numbers = #tpu.dot_dimension_numbers<[1], [0], [0], [1], [0, 0, 1, 1], [], []>} : vector<2x32xbf16>, vector<32x128xbf16>, vector<2x128xf32> -> vector<2x128xf32>
    %375 = arith.addf %371, %374 : vector<2x128xf32>
    %376 = vector.extract_strided_slice %375 {offsets = [0, 0], sizes = [2, 32], strides = [1, 1]} : vector<2x128xf32> to vector<2x32xf32>
    %cst_152 = arith.constant 5.000000e-01 : f32
    %377 = vector.broadcast %cst_152 : f32 to vector<2x32xf32>
    %378 = arith.mulf %377, %376 : vector<2x32xf32>
    %379 = math.tanh %378 : vector<2x32xf32>
    %cst_153 = arith.constant 1.000000e+00 : f32
    %380 = vector.broadcast %cst_153 : f32 to vector<2x32xf32>
    %381 = arith.addf %379, %380 : vector<2x32xf32>
    %cst_154 = arith.constant 5.000000e-01 : f32
    %382 = vector.broadcast %cst_154 : f32 to vector<2x32xf32>
    %383 = arith.mulf %382, %381 : vector<2x32xf32>
    %384 = vector.extract_strided_slice %375 {offsets = [0, 32], sizes = [2, 32], strides = [1, 1]} : vector<2x128xf32> to vector<2x32xf32>
    %cst_155 = arith.constant 5.000000e-01 : f32
    %385 = vector.broadcast %cst_155 : f32 to vector<2x32xf32>
    %386 = arith.mulf %385, %384 : vector<2x32xf32>
    %387 = math.tanh %386 : vector<2x32xf32>
    %cst_156 = arith.constant 1.000000e+00 : f32
    %388 = vector.broadcast %cst_156 : f32 to vector<2x32xf32>
    %389 = arith.addf %387, %388 : vector<2x32xf32>
    %cst_157 = arith.constant 5.000000e-01 : f32
    %390 = vector.broadcast %cst_157 : f32 to vector<2x32xf32>
    %391 = arith.mulf %390, %389 : vector<2x32xf32>
    %392 = vector.extract_strided_slice %375 {offsets = [0, 64], sizes = [2, 32], strides = [1, 1]} : vector<2x128xf32> to vector<2x32xf32>
    %393 = math.tanh %392 : vector<2x32xf32>
    %394 = vector.extract_strided_slice %375 {offsets = [0, 96], sizes = [2, 32], strides = [1, 1]} : vector<2x128xf32> to vector<2x32xf32>
    %cst_158 = arith.constant 5.000000e-01 : f32
    %395 = vector.broadcast %cst_158 : f32 to vector<2x32xf32>
    %396 = arith.mulf %395, %394 : vector<2x32xf32>
    %397 = math.tanh %396 : vector<2x32xf32>
    %cst_159 = arith.constant 1.000000e+00 : f32
    %398 = vector.broadcast %cst_159 : f32 to vector<2x32xf32>
    %399 = arith.addf %397, %398 : vector<2x32xf32>
    %cst_160 = arith.constant 5.000000e-01 : f32
    %400 = vector.broadcast %cst_160 : f32 to vector<2x32xf32>
    %401 = arith.mulf %400, %399 : vector<2x32xf32>
    %402 = arith.mulf %391, %366 : vector<2x32xf32>
    %403 = arith.mulf %383, %393 : vector<2x32xf32>
    %404 = arith.addf %402, %403 : vector<2x32xf32>
    %405 = math.tanh %404 : vector<2x32xf32>
    %406 = arith.mulf %401, %405 : vector<2x32xf32>
    %407 = arith.truncf %406 : vector<2x32xf32> to vector<2x32xbf16>
    %c2_161 = arith.constant 2 : index
    %c0_162 = arith.constant 0 : index
    %408 = vector.load %arg17[%c2_161, %c0_162] : memref<16x32xbf16, #tpu.memory_space<vmem>>, vector<2x32xbf16>
    tpu.vector_store %arg17[%c2_161, %c0_162], %407 {strides = array<i32>} : memref<16x32xbf16, #tpu.memory_space<vmem>>, vector<2x32xbf16>,
    %409 = vector.extract_strided_slice %328 {offsets = [4, 0], sizes = [2, 128], strides = [1, 1]} : vector<16x128xf32> to vector<2x128xf32>
    %410 = arith.truncf %406 : vector<2x32xf32> to vector<2x32xbf16>
    %c0_163 = arith.constant 0 : index
    %c0_164 = arith.constant 0 : index
    %411 = vector.load %arg11[%c0_163, %c0_164] : memref<32x128xbf16, #tpu.memory_space<vmem>>, vector<32x128xbf16>
    %cst_165 = arith.constant dense<0.000000e+00> : vector<2x128xf32>
    %412 = tpu.matmul %410, %411, %cst_165 {dimension_numbers = #tpu.dot_dimension_numbers<[1], [0], [0], [1], [0, 0, 1, 1], [], []>} : vector<2x32xbf16>, vector<32x128xbf16>, vector<2x128xf32> -> vector<2x128xf32>
    %413 = arith.addf %409, %412 : vector<2x128xf32>
    %414 = vector.extract_strided_slice %413 {offsets = [0, 0], sizes = [2, 32], strides = [1, 1]} : vector<2x128xf32> to vector<2x32xf32>
    %cst_166 = arith.constant 5.000000e-01 : f32
    %415 = vector.broadcast %cst_166 : f32 to vector<2x32xf32>
    %416 = arith.mulf %415, %414 : vector<2x32xf32>
    %417 = math.tanh %416 : vector<2x32xf32>
    %cst_167 = arith.constant 1.000000e+00 : f32
    %418 = vector.broadcast %cst_167 : f32 to vector<2x32xf32>
    %419 = arith.addf %417, %418 : vector<2x32xf32>
    %cst_168 = arith.constant 5.000000e-01 : f32
    %420 = vector.broadcast %cst_168 : f32 to vector<2x32xf32>
    %421 = arith.mulf %420, %419 : vector<2x32xf32>
    %422 = vector.extract_strided_slice %413 {offsets = [0, 32], sizes = [2, 32], strides = [1, 1]} : vector<2x128xf32> to vector<2x32xf32>
    %cst_169 = arith.constant 5.000000e-01 : f32
    %423 = vector.broadcast %cst_169 : f32 to vector<2x32xf32>
    %424 = arith.mulf %423, %422 : vector<2x32xf32>
    %425 = math.tanh %424 : vector<2x32xf32>
    %cst_170 = arith.constant 1.000000e+00 : f32
    %426 = vector.broadcast %cst_170 : f32 to vector<2x32xf32>
    %427 = arith.addf %425, %426 : vector<2x32xf32>
    %cst_171 = arith.constant 5.000000e-01 : f32
    %428 = vector.broadcast %cst_171 : f32 to vector<2x32xf32>
    %429 = arith.mulf %428, %427 : vector<2x32xf32>
    %430 = vector.extract_strided_slice %413 {offsets = [0, 64], sizes = [2, 32], strides = [1, 1]} : vector<2x128xf32> to vector<2x32xf32>
    %431 = math.tanh %430 : vector<2x32xf32>
    %432 = vector.extract_strided_slice %413 {offsets = [0, 96], sizes = [2, 32], strides = [1, 1]} : vector<2x128xf32> to vector<2x32xf32>
    %cst_172 = arith.constant 5.000000e-01 : f32
    %433 = vector.broadcast %cst_172 : f32 to vector<2x32xf32>
    %434 = arith.mulf %433, %432 : vector<2x32xf32>
    %435 = math.tanh %434 : vector<2x32xf32>
    %cst_173 = arith.constant 1.000000e+00 : f32
    %436 = vector.broadcast %cst_173 : f32 to vector<2x32xf32>
    %437 = arith.addf %435, %436 : vector<2x32xf32>
    %cst_174 = arith.constant 5.000000e-01 : f32
    %438 = vector.broadcast %cst_174 : f32 to vector<2x32xf32>
    %439 = arith.mulf %438, %437 : vector<2x32xf32>
    %440 = arith.mulf %429, %404 : vector<2x32xf32>
    %441 = arith.mulf %421, %431 : vector<2x32xf32>
    %442 = arith.addf %440, %441 : vector<2x32xf32>
    %443 = math.tanh %442 : vector<2x32xf32>
    %444 = arith.mulf %439, %443 : vector<2x32xf32>
    %445 = arith.truncf %444 : vector<2x32xf32> to vector<2x32xbf16>
    %c4_175 = arith.constant 4 : index
    %c0_176 = arith.constant 0 : index
    %446 = vector.load %arg17[%c4_175, %c0_176] : memref<16x32xbf16, #tpu.memory_space<vmem>>, vector<2x32xbf16>
    tpu.vector_store %arg17[%c4_175, %c0_176], %445 {strides = array<i32>} : memref<16x32xbf16, #tpu.memory_space<vmem>>, vector<2x32xbf16>,
    %447 = vector.extract_strided_slice %328 {offsets = [6, 0], sizes = [2, 128], strides = [1, 1]} : vector<16x128xf32> to vector<2x128xf32>
    %448 = arith.truncf %444 : vector<2x32xf32> to vector<2x32xbf16>
    %c0_177 = arith.constant 0 : index
    %c0_178 = arith.constant 0 : index
    %449 = vector.load %arg11[%c0_177, %c0_178] : memref<32x128xbf16, #tpu.memory_space<vmem>>, vector<32x128xbf16>
    %cst_179 = arith.constant dense<0.000000e+00> : vector<2x128xf32>
    %450 = tpu.matmul %448, %449, %cst_179 {dimension_numbers = #tpu.dot_dimension_numbers<[1], [0], [0], [1], [0, 0, 1, 1], [], []>} : vector<2x32xbf16>, vector<32x128xbf16>, vector<2x128xf32> -> vector<2x128xf32>
    %451 = arith.addf %447, %450 : vector<2x128xf32>
    %452 = vector.extract_strided_slice %451 {offsets = [0, 0], sizes = [2, 32], strides = [1, 1]} : vector<2x128xf32> to vector<2x32xf32>
    %cst_180 = arith.constant 5.000000e-01 : f32
    %453 = vector.broadcast %cst_180 : f32 to vector<2x32xf32>
    %454 = arith.mulf %453, %452 : vector<2x32xf32>
    %455 = math.tanh %454 : vector<2x32xf32>
    %cst_181 = arith.constant 1.000000e+00 : f32
    %456 = vector.broadcast %cst_181 : f32 to vector<2x32xf32>
    %457 = arith.addf %455, %456 : vector<2x32xf32>
    %cst_182 = arith.constant 5.000000e-01 : f32
    %458 = vector.broadcast %cst_182 : f32 to vector<2x32xf32>
    %459 = arith.mulf %458, %457 : vector<2x32xf32>
    %460 = vector.extract_strided_slice %451 {offsets = [0, 32], sizes = [2, 32], strides = [1, 1]} : vector<2x128xf32> to vector<2x32xf32>
    %cst_183 = arith.constant 5.000000e-01 : f32
    %461 = vector.broadcast %cst_183 : f32 to vector<2x32xf32>
    %462 = arith.mulf %461, %460 : vector<2x32xf32>
    %463 = math.tanh %462 : vector<2x32xf32>
    %cst_184 = arith.constant 1.000000e+00 : f32
    %464 = vector.broadcast %cst_184 : f32 to vector<2x32xf32>
    %465 = arith.addf %463, %464 : vector<2x32xf32>
    %cst_185 = arith.constant 5.000000e-01 : f32
    %466 = vector.broadcast %cst_185 : f32 to vector<2x32xf32>
    %467 = arith.mulf %466, %465 : vector<2x32xf32>
    %468 = vector.extract_strided_slice %451 {offsets = [0, 64], sizes = [2, 32], strides = [1, 1]} : vector<2x128xf32> to vector<2x32xf32>
    %469 = math.tanh %468 : vector<2x32xf32>
    %470 = vector.extract_strided_slice %451 {offsets = [0, 96], sizes = [2, 32], strides = [1, 1]} : vector<2x128xf32> to vector<2x32xf32>
    %cst_186 = arith.constant 5.000000e-01 : f32
    %471 = vector.broadcast %cst_186 : f32 to vector<2x32xf32>
    %472 = arith.mulf %471, %470 : vector<2x32xf32>
    %473 = math.tanh %472 : vector<2x32xf32>
    %cst_187 = arith.constant 1.000000e+00 : f32
    %474 = vector.broadcast %cst_187 : f32 to vector<2x32xf32>
    %475 = arith.addf %473, %474 : vector<2x32xf32>
    %cst_188 = arith.constant 5.000000e-01 : f32
    %476 = vector.broadcast %cst_188 : f32 to vector<2x32xf32>
    %477 = arith.mulf %476, %475 : vector<2x32xf32>
    %478 = arith.mulf %467, %442 : vector<2x32xf32>
    %479 = arith.mulf %459, %469 : vector<2x32xf32>
    %480 = arith.addf %478, %479 : vector<2x32xf32>
    %481 = math.tanh %480 : vector<2x32xf32>
    %482 = arith.mulf %477, %481 : vector<2x32xf32>
    %483 = arith.truncf %482 : vector<2x32xf32> to vector<2x32xbf16>
    %c6_189 = arith.constant 6 : index
    %c0_190 = arith.constant 0 : index
    %484 = vector.load %arg17[%c6_189, %c0_190] : memref<16x32xbf16, #tpu.memory_space<vmem>>, vector<2x32xbf16>
    tpu.vector_store %arg17[%c6_189, %c0_190], %483 {strides = array<i32>} : memref<16x32xbf16, #tpu.memory_space<vmem>>, vector<2x32xbf16>,
    %485 = vector.extract_strided_slice %328 {offsets = [8, 0], sizes = [2, 128], strides = [1, 1]} : vector<16x128xf32> to vector<2x128xf32>
    %486 = arith.truncf %482 : vector<2x32xf32> to vector<2x32xbf16>
    %c0_191 = arith.constant 0 : index
    %c0_192 = arith.constant 0 : index
    %487 = vector.load %arg11[%c0_191, %c0_192] : memref<32x128xbf16, #tpu.memory_space<vmem>>, vector<32x128xbf16>
    %cst_193 = arith.constant dense<0.000000e+00> : vector<2x128xf32>
    %488 = tpu.matmul %486, %487, %cst_193 {dimension_numbers = #tpu.dot_dimension_numbers<[1], [0], [0], [1], [0, 0, 1, 1], [], []>} : vector<2x32xbf16>, vector<32x128xbf16>, vector<2x128xf32> -> vector<2x128xf32>
    %489 = arith.addf %485, %488 : vector<2x128xf32>
    %490 = vector.extract_strided_slice %489 {offsets = [0, 0], sizes = [2, 32], strides = [1, 1]} : vector<2x128xf32> to vector<2x32xf32>
    %cst_194 = arith.constant 5.000000e-01 : f32
    %491 = vector.broadcast %cst_194 : f32 to vector<2x32xf32>
    %492 = arith.mulf %491, %490 : vector<2x32xf32>
    %493 = math.tanh %492 : vector<2x32xf32>
    %cst_195 = arith.constant 1.000000e+00 : f32
    %494 = vector.broadcast %cst_195 : f32 to vector<2x32xf32>
    %495 = arith.addf %493, %494 : vector<2x32xf32>
    %cst_196 = arith.constant 5.000000e-01 : f32
    %496 = vector.broadcast %cst_196 : f32 to vector<2x32xf32>
    %497 = arith.mulf %496, %495 : vector<2x32xf32>
    %498 = vector.extract_strided_slice %489 {offsets = [0, 32], sizes = [2, 32], strides = [1, 1]} : vector<2x128xf32> to vector<2x32xf32>
    %cst_197 = arith.constant 5.000000e-01 : f32
    %499 = vector.broadcast %cst_197 : f32 to vector<2x32xf32>
    %500 = arith.mulf %499, %498 : vector<2x32xf32>
    %501 = math.tanh %500 : vector<2x32xf32>
    %cst_198 = arith.constant 1.000000e+00 : f32
    %502 = vector.broadcast %cst_198 : f32 to vector<2x32xf32>
    %503 = arith.addf %501, %502 : vector<2x32xf32>
    %cst_199 = arith.constant 5.000000e-01 : f32
    %504 = vector.broadcast %cst_199 : f32 to vector<2x32xf32>
    %505 = arith.mulf %504, %503 : vector<2x32xf32>
    %506 = vector.extract_strided_slice %489 {offsets = [0, 64], sizes = [2, 32], strides = [1, 1]} : vector<2x128xf32> to vector<2x32xf32>
    %507 = math.tanh %506 : vector<2x32xf32>
    %508 = vector.extract_strided_slice %489 {offsets = [0, 96], sizes = [2, 32], strides = [1, 1]} : vector<2x128xf32> to vector<2x32xf32>
    %cst_200 = arith.constant 5.000000e-01 : f32
    %509 = vector.broadcast %cst_200 : f32 to vector<2x32xf32>
    %510 = arith.mulf %509, %508 : vector<2x32xf32>
    %511 = math.tanh %510 : vector<2x32xf32>
    %cst_201 = arith.constant 1.000000e+00 : f32
    %512 = vector.broadcast %cst_201 : f32 to vector<2x32xf32>
    %513 = arith.addf %511, %512 : vector<2x32xf32>
    %cst_202 = arith.constant 5.000000e-01 : f32
    %514 = vector.broadcast %cst_202 : f32 to vector<2x32xf32>
    %515 = arith.mulf %514, %513 : vector<2x32xf32>
    %516 = arith.mulf %505, %480 : vector<2x32xf32>
    %517 = arith.mulf %497, %507 : vector<2x32xf32>
    %518 = arith.addf %516, %517 : vector<2x32xf32>
    %519 = math.tanh %518 : vector<2x32xf32>
    %520 = arith.mulf %515, %519 : vector<2x32xf32>
    %521 = arith.truncf %520 : vector<2x32xf32> to vector<2x32xbf16>
    %c8_203 = arith.constant 8 : index
    %c0_204 = arith.constant 0 : index
    %522 = vector.load %arg17[%c8_203, %c0_204] : memref<16x32xbf16, #tpu.memory_space<vmem>>, vector<2x32xbf16>
    tpu.vector_store %arg17[%c8_203, %c0_204], %521 {strides = array<i32>} : memref<16x32xbf16, #tpu.memory_space<vmem>>, vector<2x32xbf16>,
    %523 = vector.extract_strided_slice %328 {offsets = [10, 0], sizes = [2, 128], strides = [1, 1]} : vector<16x128xf32> to vector<2x128xf32>
    %524 = arith.truncf %520 : vector<2x32xf32> to vector<2x32xbf16>
    %c0_205 = arith.constant 0 : index
    %c0_206 = arith.constant 0 : index
    %525 = vector.load %arg11[%c0_205, %c0_206] : memref<32x128xbf16, #tpu.memory_space<vmem>>, vector<32x128xbf16>
    %cst_207 = arith.constant dense<0.000000e+00> : vector<2x128xf32>
    %526 = tpu.matmul %524, %525, %cst_207 {dimension_numbers = #tpu.dot_dimension_numbers<[1], [0], [0], [1], [0, 0, 1, 1], [], []>} : vector<2x32xbf16>, vector<32x128xbf16>, vector<2x128xf32> -> vector<2x128xf32>
    %527 = arith.addf %523, %526 : vector<2x128xf32>
    %528 = vector.extract_strided_slice %527 {offsets = [0, 0], sizes = [2, 32], strides = [1, 1]} : vector<2x128xf32> to vector<2x32xf32>
    %cst_208 = arith.constant 5.000000e-01 : f32
    %529 = vector.broadcast %cst_208 : f32 to vector<2x32xf32>
    %530 = arith.mulf %529, %528 : vector<2x32xf32>
    %531 = math.tanh %530 : vector<2x32xf32>
    %cst_209 = arith.constant 1.000000e+00 : f32
    %532 = vector.broadcast %cst_209 : f32 to vector<2x32xf32>
    %533 = arith.addf %531, %532 : vector<2x32xf32>
    %cst_210 = arith.constant 5.000000e-01 : f32
    %534 = vector.broadcast %cst_210 : f32 to vector<2x32xf32>
    %535 = arith.mulf %534, %533 : vector<2x32xf32>
    %536 = vector.extract_strided_slice %527 {offsets = [0, 32], sizes = [2, 32], strides = [1, 1]} : vector<2x128xf32> to vector<2x32xf32>
    %cst_211 = arith.constant 5.000000e-01 : f32
    %537 = vector.broadcast %cst_211 : f32 to vector<2x32xf32>
    %538 = arith.mulf %537, %536 : vector<2x32xf32>
    %539 = math.tanh %538 : vector<2x32xf32>
    %cst_212 = arith.constant 1.000000e+00 : f32
    %540 = vector.broadcast %cst_212 : f32 to vector<2x32xf32>
    %541 = arith.addf %539, %540 : vector<2x32xf32>
    %cst_213 = arith.constant 5.000000e-01 : f32
    %542 = vector.broadcast %cst_213 : f32 to vector<2x32xf32>
    %543 = arith.mulf %542, %541 : vector<2x32xf32>
    %544 = vector.extract_strided_slice %527 {offsets = [0, 64], sizes = [2, 32], strides = [1, 1]} : vector<2x128xf32> to vector<2x32xf32>
    %545 = math.tanh %544 : vector<2x32xf32>
    %546 = vector.extract_strided_slice %527 {offsets = [0, 96], sizes = [2, 32], strides = [1, 1]} : vector<2x128xf32> to vector<2x32xf32>
    %cst_214 = arith.constant 5.000000e-01 : f32
    %547 = vector.broadcast %cst_214 : f32 to vector<2x32xf32>
    %548 = arith.mulf %547, %546 : vector<2x32xf32>
    %549 = math.tanh %548 : vector<2x32xf32>
    %cst_215 = arith.constant 1.000000e+00 : f32
    %550 = vector.broadcast %cst_215 : f32 to vector<2x32xf32>
    %551 = arith.addf %549, %550 : vector<2x32xf32>
    %cst_216 = arith.constant 5.000000e-01 : f32
    %552 = vector.broadcast %cst_216 : f32 to vector<2x32xf32>
    %553 = arith.mulf %552, %551 : vector<2x32xf32>
    %554 = arith.mulf %543, %518 : vector<2x32xf32>
    %555 = arith.mulf %535, %545 : vector<2x32xf32>
    %556 = arith.addf %554, %555 : vector<2x32xf32>
    %557 = math.tanh %556 : vector<2x32xf32>
    %558 = arith.mulf %553, %557 : vector<2x32xf32>
    %559 = arith.truncf %558 : vector<2x32xf32> to vector<2x32xbf16>
    %c10_217 = arith.constant 10 : index
    %c0_218 = arith.constant 0 : index
    %560 = vector.load %arg17[%c10_217, %c0_218] : memref<16x32xbf16, #tpu.memory_space<vmem>>, vector<2x32xbf16>
    tpu.vector_store %arg17[%c10_217, %c0_218], %559 {strides = array<i32>} : memref<16x32xbf16, #tpu.memory_space<vmem>>, vector<2x32xbf16>,
    %561 = vector.extract_strided_slice %328 {offsets = [12, 0], sizes = [2, 128], strides = [1, 1]} : vector<16x128xf32> to vector<2x128xf32>
    %562 = arith.truncf %558 : vector<2x32xf32> to vector<2x32xbf16>
    %c0_219 = arith.constant 0 : index
    %c0_220 = arith.constant 0 : index
    %563 = vector.load %arg11[%c0_219, %c0_220] : memref<32x128xbf16, #tpu.memory_space<vmem>>, vector<32x128xbf16>
    %cst_221 = arith.constant dense<0.000000e+00> : vector<2x128xf32>
    %564 = tpu.matmul %562, %563, %cst_221 {dimension_numbers = #tpu.dot_dimension_numbers<[1], [0], [0], [1], [0, 0, 1, 1], [], []>} : vector<2x32xbf16>, vector<32x128xbf16>, vector<2x128xf32> -> vector<2x128xf32>
    %565 = arith.addf %561, %564 : vector<2x128xf32>
    %566 = vector.extract_strided_slice %565 {offsets = [0, 0], sizes = [2, 32], strides = [1, 1]} : vector<2x128xf32> to vector<2x32xf32>
    %cst_222 = arith.constant 5.000000e-01 : f32
    %567 = vector.broadcast %cst_222 : f32 to vector<2x32xf32>
    %568 = arith.mulf %567, %566 : vector<2x32xf32>
    %569 = math.tanh %568 : vector<2x32xf32>
    %cst_223 = arith.constant 1.000000e+00 : f32
    %570 = vector.broadcast %cst_223 : f32 to vector<2x32xf32>
    %571 = arith.addf %569, %570 : vector<2x32xf32>
    %cst_224 = arith.constant 5.000000e-01 : f32
    %572 = vector.broadcast %cst_224 : f32 to vector<2x32xf32>
    %573 = arith.mulf %572, %571 : vector<2x32xf32>
    %574 = vector.extract_strided_slice %565 {offsets = [0, 32], sizes = [2, 32], strides = [1, 1]} : vector<2x128xf32> to vector<2x32xf32>
    %cst_225 = arith.constant 5.000000e-01 : f32
    %575 = vector.broadcast %cst_225 : f32 to vector<2x32xf32>
    %576 = arith.mulf %575, %574 : vector<2x32xf32>
    %577 = math.tanh %576 : vector<2x32xf32>
    %cst_226 = arith.constant 1.000000e+00 : f32
    %578 = vector.broadcast %cst_226 : f32 to vector<2x32xf32>
    %579 = arith.addf %577, %578 : vector<2x32xf32>
    %cst_227 = arith.constant 5.000000e-01 : f32
    %580 = vector.broadcast %cst_227 : f32 to vector<2x32xf32>
    %581 = arith.mulf %580, %579 : vector<2x32xf32>
    %582 = vector.extract_strided_slice %565 {offsets = [0, 64], sizes = [2, 32], strides = [1, 1]} : vector<2x128xf32> to vector<2x32xf32>
    %583 = math.tanh %582 : vector<2x32xf32>
    %584 = vector.extract_strided_slice %565 {offsets = [0, 96], sizes = [2, 32], strides = [1, 1]} : vector<2x128xf32> to vector<2x32xf32>
    %cst_228 = arith.constant 5.000000e-01 : f32
    %585 = vector.broadcast %cst_228 : f32 to vector<2x32xf32>
    %586 = arith.mulf %585, %584 : vector<2x32xf32>
    %587 = math.tanh %586 : vector<2x32xf32>
    %cst_229 = arith.constant 1.000000e+00 : f32
    %588 = vector.broadcast %cst_229 : f32 to vector<2x32xf32>
    %589 = arith.addf %587, %588 : vector<2x32xf32>
    %cst_230 = arith.constant 5.000000e-01 : f32
    %590 = vector.broadcast %cst_230 : f32 to vector<2x32xf32>
    %591 = arith.mulf %590, %589 : vector<2x32xf32>
    %592 = arith.mulf %581, %556 : vector<2x32xf32>
    %593 = arith.mulf %573, %583 : vector<2x32xf32>
    %594 = arith.addf %592, %593 : vector<2x32xf32>
    %595 = math.tanh %594 : vector<2x32xf32>
    %596 = arith.mulf %591, %595 : vector<2x32xf32>
    %597 = arith.truncf %596 : vector<2x32xf32> to vector<2x32xbf16>
    %c12_231 = arith.constant 12 : index
    %c0_232 = arith.constant 0 : index
    %598 = vector.load %arg17[%c12_231, %c0_232] : memref<16x32xbf16, #tpu.memory_space<vmem>>, vector<2x32xbf16>
    tpu.vector_store %arg17[%c12_231, %c0_232], %597 {strides = array<i32>} : memref<16x32xbf16, #tpu.memory_space<vmem>>, vector<2x32xbf16>,
    %599 = vector.extract_strided_slice %328 {offsets = [14, 0], sizes = [2, 128], strides = [1, 1]} : vector<16x128xf32> to vector<2x128xf32>
    %600 = arith.truncf %596 : vector<2x32xf32> to vector<2x32xbf16>
    %c0_233 = arith.constant 0 : index
    %c0_234 = arith.constant 0 : index
    %601 = vector.load %arg11[%c0_233, %c0_234] : memref<32x128xbf16, #tpu.memory_space<vmem>>, vector<32x128xbf16>
    %cst_235 = arith.constant dense<0.000000e+00> : vector<2x128xf32>
    %602 = tpu.matmul %600, %601, %cst_235 {dimension_numbers = #tpu.dot_dimension_numbers<[1], [0], [0], [1], [0, 0, 1, 1], [], []>} : vector<2x32xbf16>, vector<32x128xbf16>, vector<2x128xf32> -> vector<2x128xf32>
    %603 = arith.addf %599, %602 : vector<2x128xf32>
    %604 = vector.extract_strided_slice %603 {offsets = [0, 0], sizes = [2, 32], strides = [1, 1]} : vector<2x128xf32> to vector<2x32xf32>
    %cst_236 = arith.constant 5.000000e-01 : f32
    %605 = vector.broadcast %cst_236 : f32 to vector<2x32xf32>
    %606 = arith.mulf %605, %604 : vector<2x32xf32>
    %607 = math.tanh %606 : vector<2x32xf32>
    %cst_237 = arith.constant 1.000000e+00 : f32
    %608 = vector.broadcast %cst_237 : f32 to vector<2x32xf32>
    %609 = arith.addf %607, %608 : vector<2x32xf32>
    %cst_238 = arith.constant 5.000000e-01 : f32
    %610 = vector.broadcast %cst_238 : f32 to vector<2x32xf32>
    %611 = arith.mulf %610, %609 : vector<2x32xf32>
    %612 = vector.extract_strided_slice %603 {offsets = [0, 32], sizes = [2, 32], strides = [1, 1]} : vector<2x128xf32> to vector<2x32xf32>
    %cst_239 = arith.constant 5.000000e-01 : f32
    %613 = vector.broadcast %cst_239 : f32 to vector<2x32xf32>
    %614 = arith.mulf %613, %612 : vector<2x32xf32>
    %615 = math.tanh %614 : vector<2x32xf32>
    %cst_240 = arith.constant 1.000000e+00 : f32
    %616 = vector.broadcast %cst_240 : f32 to vector<2x32xf32>
    %617 = arith.addf %615, %616 : vector<2x32xf32>
    %cst_241 = arith.constant 5.000000e-01 : f32
    %618 = vector.broadcast %cst_241 : f32 to vector<2x32xf32>
    %619 = arith.mulf %618, %617 : vector<2x32xf32>
    %620 = vector.extract_strided_slice %603 {offsets = [0, 64], sizes = [2, 32], strides = [1, 1]} : vector<2x128xf32> to vector<2x32xf32>
    %621 = math.tanh %620 : vector<2x32xf32>
    %622 = vector.extract_strided_slice %603 {offsets = [0, 96], sizes = [2, 32], strides = [1, 1]} : vector<2x128xf32> to vector<2x32xf32>
    %cst_242 = arith.constant 5.000000e-01 : f32
    %623 = vector.broadcast %cst_242 : f32 to vector<2x32xf32>
    %624 = arith.mulf %623, %622 : vector<2x32xf32>
    %625 = math.tanh %624 : vector<2x32xf32>
    %cst_243 = arith.constant 1.000000e+00 : f32
    %626 = vector.broadcast %cst_243 : f32 to vector<2x32xf32>
    %627 = arith.addf %625, %626 : vector<2x32xf32>
    %cst_244 = arith.constant 5.000000e-01 : f32
    %628 = vector.broadcast %cst_244 : f32 to vector<2x32xf32>
    %629 = arith.mulf %628, %627 : vector<2x32xf32>
    %630 = arith.mulf %619, %594 : vector<2x32xf32>
    %631 = arith.mulf %611, %621 : vector<2x32xf32>
    %632 = arith.addf %630, %631 : vector<2x32xf32>
    %633 = math.tanh %632 : vector<2x32xf32>
    %634 = arith.mulf %629, %633 : vector<2x32xf32>
    %635 = arith.truncf %634 : vector<2x32xf32> to vector<2x32xbf16>
    %c14_245 = arith.constant 14 : index
    %c0_246 = arith.constant 0 : index
    %636 = vector.load %arg17[%c14_245, %c0_246] : memref<16x32xbf16, #tpu.memory_space<vmem>>, vector<2x32xbf16>
    tpu.vector_store %arg17[%c14_245, %c0_246], %635 {strides = array<i32>} : memref<16x32xbf16, #tpu.memory_space<vmem>>, vector<2x32xbf16>,
    %c1_247 = arith.constant 1 : index
    %c0_248 = arith.constant 0 : index
    %c0_249 = arith.constant 0 : index
    %637 = vector.load %arg18[%c1_247, %c0_248, %c0_249] : memref<2x2x32xf32, #tpu.memory_space<vmem>>, vector<1x2x32xf32>
    %638 = vector.shape_cast %637 : vector<1x2x32xf32> to vector<2x32xf32>
    %639 = vector.shape_cast %634 : vector<2x32xf32> to vector<1x2x32xf32>
    tpu.vector_store %arg18[%c1_247, %c0_248, %c0_249], %639 {strides = array<i32>} : memref<2x2x32xf32, #tpu.memory_space<vmem>>, vector<1x2x32xf32>,
    %c1_250 = arith.constant 1 : index
    %c0_251 = arith.constant 0 : index
    %c0_252 = arith.constant 0 : index
    %640 = vector.load %arg19[%c1_250, %c0_251, %c0_252] : memref<2x2x32xf32, #tpu.memory_space<vmem>>, vector<1x2x32xf32>
    %641 = vector.shape_cast %640 : vector<1x2x32xf32> to vector<2x32xf32>
    %642 = vector.shape_cast %632 : vector<2x32xf32> to vector<1x2x32xf32>
    tpu.vector_store %arg19[%c1_250, %c0_251, %c0_252], %642 {strides = array<i32>} : memref<2x2x32xf32, #tpu.memory_space<vmem>>, vector<1x2x32xf32>,
    return
  }
  func.func @transform_0(%arg0: i32) -> (i32, i32) {
    %c0_i32 = arith.constant 0 : i32
    %c0_i32_0 = arith.constant 0 : i32
    return %arg0, %c0_i32 : i32, i32
  }
  func.func @transform_1(%arg0: i32) -> (i32, i32) {
    %c0_i32 = arith.constant 0 : i32
    %c0_i32_0 = arith.constant 0 : i32
    %c0_i32_1 = arith.constant 0 : i32
    return %c0_i32, %c0_i32_0 : i32, i32
  }
  func.func @transform_2(%arg0: i32) -> (i32, i32) {
    %c0_i32 = arith.constant 0 : i32
    %c0_i32_0 = arith.constant 0 : i32
    %c0_i32_1 = arith.constant 0 : i32
    return %c0_i32, %c0_i32_0 : i32, i32
  }
  func.func @transform_3(%arg0: i32) -> (i32, i32) {
    %c0_i32 = arith.constant 0 : i32
    %c0_i32_0 = arith.constant 0 : i32
    %c0_i32_1 = arith.constant 0 : i32
    return %c0_i32, %c0_i32_0 : i32, i32
  }
  func.func @transform_4(%arg0: i32) -> (i32, i32) {
    %c0_i32 = arith.constant 0 : i32
    %c0_i32_0 = arith.constant 0 : i32
    %c0_i32_1 = arith.constant 0 : i32
    return %c0_i32, %c0_i32_0 : i32, i32
  }
  func.func @transform_5(%arg0: i32) -> (i32, i32) {
    %c0_i32 = arith.constant 0 : i32
    %c0_i32_0 = arith.constant 0 : i32
    %c0_i32_1 = arith.constant 0 : i32
    return %c0_i32, %c0_i32_0 : i32, i32
  }
  func.func @transform_6(%arg0: i32) -> (i32, i32) {
    %c0_i32 = arith.constant 0 : i32
    %c0_i32_0 = arith.constant 0 : i32
    %c0_i32_1 = arith.constant 0 : i32
    return %c0_i32, %c0_i32_0 : i32, i32
  }
  func.func @transform_7(%arg0: i32) -> (i32, i32) {
    %c0_i32 = arith.constant 0 : i32
    %c0_i32_0 = arith.constant 0 : i32
    %c0_i32_1 = arith.constant 0 : i32
    return %c0_i32, %c0_i32_0 : i32, i32
  }
  func.func @transform_8(%arg0: i32) -> (i32, i32) {
    %c0_i32 = arith.constant 0 : i32
    %c0_i32_0 = arith.constant 0 : i32
    %c0_i32_1 = arith.constant 0 : i32
    return %c0_i32, %c0_i32_0 : i32, i32
  }
  func.func @transform_9(%arg0: i32) -> (i32, i32) {
    %c0_i32 = arith.constant 0 : i32
    %c0_i32_0 = arith.constant 0 : i32
    %c0_i32_1 = arith.constant 0 : i32
    return %c0_i32, %c0_i32_0 : i32, i32
  }
  func.func @transform_10(%arg0: i32) -> (i32, i32) {
    %c0_i32 = arith.constant 0 : i32
    %c0_i32_0 = arith.constant 0 : i32
    %c0_i32_1 = arith.constant 0 : i32
    return %c0_i32, %c0_i32_0 : i32, i32
  }
  func.func @transform_11(%arg0: i32) -> (i32, i32) {
    %c0_i32 = arith.constant 0 : i32
    %c0_i32_0 = arith.constant 0 : i32
    %c0_i32_1 = arith.constant 0 : i32
    return %c0_i32, %c0_i32_0 : i32, i32
  }
  func.func @transform_12(%arg0: i32) -> (i32, i32) {
    %c0_i32 = arith.constant 0 : i32
    %c0_i32_0 = arith.constant 0 : i32
    %c0_i32_1 = arith.constant 0 : i32
    return %c0_i32, %c0_i32_0 : i32, i32
  }
  func.func @transform_13(%arg0: i32) -> (i32, i32) {
    %c0_i32 = arith.constant 0 : i32
    %c0_i32_0 = arith.constant 0 : i32
    %c0_i32_1 = arith.constant 0 : i32
    return %c0_i32, %c0_i32_0 : i32, i32
  }
  func.func @transform_14(%arg0: i32) -> (i32, i32) {
    %c0_i32 = arith.constant 0 : i32
    %c0_i32_0 = arith.constant 0 : i32
    %c0_i32_1 = arith.constant 0 : i32
    return %c0_i32, %c0_i32_0 : i32, i32
  }
  func.func @transform_15(%arg0: i32) -> (i32, i32) {
    %c0_i32 = arith.constant 0 : i32
    %c0_i32_0 = arith.constant 0 : i32
    %c0_i32_1 = arith.constant 0 : i32
    return %c0_i32, %c0_i32_0 : i32, i32
  }
  func.func @transform_16(%arg0: i32) -> (i32, i32) {
    %c0_i32 = arith.constant 0 : i32
    %c0_i32_0 = arith.constant 0 : i32
    return %arg0, %c0_i32 : i32, i32
  }
}

</mosaic_0001>

<bundles_post_ra>
// kernel: tpu_custom_call.1
= control target key start
LH: loop header
LB: loop body
LE: loop exit
PB: predicated region body
PF: predicated region fallthrough
CT: control target
= control target key end

     0   :  { %s2630_s0 = inlined_call_operand.hbm [shape: bf16[16,32], index: 0, kind: input, shape index: {}]   ;;  %s2631_s1 = inlined_call_operand.hbm [shape: bf16[2,16], index: 1, kind: input, shape index: {}]   ;;  %s2632_s2 = inlined_call_operand.hbm [shape: bf16[32,128], index: 2, kind: input, shape index: {}]   ;;  %s2633_s3 = inlined_call_operand.hbm [shape: bf16[32,128], index: 3, kind: input, shape index: {}]   ;;  %s2634_s4 = inlined_call_operand.vmem [shape: f32[1,128], index: 4, kind: input, shape index: {}]   ;;  %s2635_s5 = inlined_call_operand.hbm [shape: bf16[16,32], index: 5, kind: input, shape index: {}]   ;;  %s2636_s6 = inlined_call_operand.vmem [shape: f32[1,32], index: 6, kind: input, shape index: {}]   ;;  %s2637_s7 = inlined_call_operand.hbm [shape: bf16[16,32], index: 7, kind: input, shape index: {}]   ;;  %s2638_s8 = inlined_call_operand.vmem [shape: f32[1,32], index: 8, kind: input, shape index: {}]   ;;  %s2639_s9 = inlined_call_operand.hbm [shape: bf16[32,128], index: 9, kind: input, shape index: {}]   ;;  %s2640_s10 = inlined_call_operand.hbm [shape: bf16[32,128], index: 10, kind: input, shape index: {}]   ;;  %s2641_s11 = inlined_call_operand.hbm [shape: f32[1,128], index: 11, kind: input, shape index: {}]   ;;  %s2642_s12 = inlined_call_operand.vmem [shape: bf16[16,32], index: 12, kind: input, shape index: {}]   ;;  %s2643_s13 = inlined_call_operand.vmem [shape: f32[1,32], index: 13, kind: input, shape index: {}]   ;;  %s2644_s14 = inlined_call_operand.hbm [shape: bf16[16,32], index: 14, kind: input, shape index: {}]   ;;  %s2645_s15 = inlined_call_operand.vmem [shape: f32[1,32], index: 15, kind: input, shape index: {}]   ;;  %s2646_s16 = inlined_call_operand.hbm [shape: bf16[16,32], index: 16, kind: output, shape index: {}]  }
   0x1   :  { %2647 = sst [smem:[#allocation30_spill]] %s2630_s0 }
   0x2   :  { %21 = vsyncpa [#allocation6], 0 }
   0x3   :  { %22 = vsyncpa [#allocation9], 0 }
   0x4   :  { %23 = vsyncpa [#allocation12], 0 }
   0x5   :  { %24 = vsyncpa [#allocation15], 0 }
   0x6   :  { %25 = vsyncpa [#allocation18], 0 }
   0x7   :  { %26 = vsyncpa [#allocation21], 0  ;;  %s46_s23 = sshll.u32 %s2631_s1, 4  ;;  %s47_s23 = int_to_ptr.hbm [resolvable:$true] %s46_s23 }
   0x8   :  { %27 = vsyncpa [#allocation7], 0  ;;  %s2224_s24 = smov [#allocation8]   ;;  %s69_s28 = sshll.u32 %s2633_s3, 4  ;;  %s70_s28 = int_to_ptr.hbm [resolvable:$true] %s69_s28 }
   0x9   :  { %s48_s25 = sshll.u32 %s2224_s24, 4  ;;  %s2225_s29 = smov [#allocation11]   ;;  %s49_s25 = int_to_ptr.vmem [resolvable:$true] %s48_s25 }
   0xa   :  { %51 = dma.hbm_to_vmem [thread:$0]  %s47_s23, 16, %s49_s25, [#allocation9]  }
   0xb   :  { %s71_s30 = sshll.u32 %s2225_s29, 4  ;;  %s99_s18 = sshll.u32 %s2637_s7, 4  ;;  %s72_s30 = int_to_ptr.vmem [resolvable:$true] %s71_s30  ;;  %s100_s18 = int_to_ptr.hbm [resolvable:$true] %s99_s18 }
   0xc   :  { %s2226_s1 = smov 64   ;;  %s2227_s19 = smov 4  }
   0xd   :  { %77 = dma.hbm_to_vmem [thread:$0]  %s70_s28, 256, %s72_s30, [#allocation12], %s2226_s1, %s2226_s1, %s2227_s19  }
   0xe   :  { %s127_s22 = sshll.u32 %s2640_s10, 4  ;;  %s2228_s3 = smov [#allocation14]   ;;  %s128_s22 = int_to_ptr.hbm [resolvable:$true] %s127_s22 }
   0xf   :  { %s101_s23 = sshll.u32 %s2228_s3, 4  ;;  %s2229_s7 = smov [#allocation17]   ;;  %s102_s23 = int_to_ptr.vmem [resolvable:$true] %s101_s23 }
  0x10   :  { %107 = dma.hbm_to_vmem [thread:$0]  %s100_s18, 128, %s102_s23, [#allocation15], %s2226_s1, %s2226_s1, %s2227_s19  }
  0x11   :  { %s129_s24 = sshll.u32 %s2229_s7, 4  ;;  %s2648_s27 = sld [smem:[#allocation30_spill]]  ;;  %s130_s24 = int_to_ptr.vmem [resolvable:$true] %s129_s24 }
  0x12   :  { %135 = dma.hbm_to_vmem [thread:$0]  %s128_s22, 256, %s130_s24, [#allocation18], %s2226_s1, %s2226_s1, %s2227_s19  }
  0x13   :  { %s56_s30 = sshll.u32 %s2632_s2, 4  ;;  %s2230_s0 = smov [#allocation5]   ;;  %s57_s30 = int_to_ptr.hbm [resolvable:$true] %s56_s30 }
  0x14   :  { %s34_s17 = sshll.u32 %s2230_s0, 4  ;;  %s2231_s18 = smov [#allocation10]   ;;  %s35_s17 = int_to_ptr.vmem [resolvable:$true] %s34_s17 }
  0x15   :  { %s58_s20 = sshll.u32 %s2231_s18, 4  ;;  %s84_s23 = sshll.u32 %s2635_s5, 4  ;;  %s59_s20 = int_to_ptr.vmem [resolvable:$true] %s58_s20  ;;  %s85_s23 = int_to_ptr.hbm [resolvable:$true] %s84_s23 }
  0x16   :  { %64 = dma.hbm_to_vmem [thread:$0]  %s57_s30, 256, %s59_s20, [#allocation9], %s2226_s1, %s2226_s1, %s2227_s19  }
  0x17   :  { %s32_s29 = sshll.u32 %s2648_s27, 4  ;;  %s114_s7 = sshll.u32 %s2639_s9, 4  ;;  %s33_s29 = int_to_ptr.hbm [resolvable:$true] %s32_s29  ;;  %s115_s7 = int_to_ptr.hbm [resolvable:$true] %s114_s7 }
  0x18   :  { %40 = dma.hbm_to_vmem [thread:$0]  %s33_s29, 128, %s35_s17, [#allocation6], %s2226_s1, %s2226_s1, %s2227_s19  }
  0x19   :  { %s2232_s24 = smov [#allocation13]   ;;  %s2233_s26 = smov [#allocation16]  }
  0x1a   :  { %s86_s25 = sshll.u32 %s2232_s24, 4  ;;  %s116_s5 = sshll.u32 %s2233_s26, 4  ;;  %s87_s25 = int_to_ptr.vmem [resolvable:$true] %s86_s25  ;;  %s117_s5 = int_to_ptr.vmem [resolvable:$true] %s116_s5 }
  0x1b   :  { %92 = dma.hbm_to_vmem [thread:$0]  %s85_s23, 128, %s87_s25, [#allocation12], %s2226_s1, %s2226_s1, %s2227_s19  }
  0x1c   :  { %s141_s10 = sshll.u32 %s2641_s11, 4  ;;  %s155_s30 = sshll.u32 %s2644_s14, 4  ;;  %s142_s10 = int_to_ptr.hbm [resolvable:$true] %s141_s10  ;;  %s156_s30 = int_to_ptr.hbm [resolvable:$true] %s155_s30 }
  0x1d   :  { %122 = dma.hbm_to_vmem [thread:$0]  %s115_s7, 256, %s117_s5, [#allocation15], %s2226_s1, %s2226_s1, %s2227_s19  }
  0x1e   :  { %s2234_s0 = smov [#allocation19]   ;;  %s2235_s18 = smov [#allocation20]  }
  0x1f   :  { %s143_s17 = sshll.u32 %s2234_s0, 4  ;;  %s157_s20 = sshll.u32 %s2235_s18, 4  ;;  %s144_s17 = int_to_ptr.vmem [resolvable:$true] %s143_s17  ;;  %s158_s20 = int_to_ptr.vmem [resolvable:$true] %s157_s20 }
  0x20   :  { %146 = dma.hbm_to_vmem [thread:$0]  %s142_s10, 16, %s144_s17, [#allocation18]  }
  0x21   :  { %163 = dma.hbm_to_vmem [thread:$0]  %s156_s30, 128, %s158_s20, [#allocation21], %s2226_s1, %s2226_s1, %s2227_s19  }
  0x22   :  { %2210 = dma.done.wait [#allocation6], 128  }
  0x23   :  { %2211 = vsyncadd [#allocation6], 4294967168 }
  0x24   :  { %2212 = dma.done.wait [#allocation9], 272  }
  0x25   :  { %2213 = vsyncadd [#allocation9], 4294967024 }
  0x26   :  { %2214 = dma.done.wait [#allocation12], 384  }
  0x27   :  { %2215 = vsyncadd [#allocation12], 4294966912 }
  0x28   :  { %2216 = dma.done.wait [#allocation15], 384  }
  0x29   :  { %2217 = vsyncadd [#allocation15], 4294966912 }
  0x2a   :  { %2218 = dma.done.wait [#allocation18], 272  }
  0x2b   :  { %2219 = vsyncadd [#allocation18], 4294967024 }
  0x2c   :  { %2220 = dma.done.wait [#allocation21], 128  }
  0x2d   :  { %2221 = vsyncadd [#allocation21], 4294967168  ;;  %v1787_v0 = vld [vmem:[#allocation13] sm:$0xff]  ;;  %v1788_v1 = vld [vmem:[#allocation14] sm:$0xff]  ;;  %vm224_vm0 = vcmask 130048   ;;  %vm350_vm1 = vcmask 261120  }
  0x2e   :  { %v1793_v2 = vld [vmem:[#allocation10 + $0x8] sm:$0xff]  ;;  %v1795_v3 = vld [vmem:[#allocation11 + $0x8] sm:$0xff]  ;;  %235 = vmatpush.bf16.msra.mxu0 %v1787_v0  ;;  %262 = vmatpush.bf16.msra.mxu1 %v1788_v1  ;;  %v1792_v5 = vld [vmem:[#allocation10] sm:$0xff]  ;;  %vm241_vm2 = vcmask 254976   ;;  %vm435_vm3 = vcmask 253952   ;;  %vm653_vm4 = vcmask 257027  }
  0x2f   :  { %v2378_v4 = vld [vmem:[#allocation8] sm:$0x1]  ;;  %v1791_v6 = vld [vmem:[#allocation5] sm:$0xff]  ;;  %v1844_v8 = vld [vmem:[%s2636_s6] ss:$0 sm:$0xff]  ;;  %vm580_vm5 = vcmask 256002  }
  0x30   :  { %v1794_v7 = vld [vmem:[#allocation11] sm:$0xff]  ;;  %v1845_v9 = vld [vmem:[%s2638_s8] ss:$0 sm:$0xff]  ;;  %s2236_s8 = smov 32   ;;  %v1797_v38 = vld [vmem:[#allocation11 + $0x8] sm:$0xff]  ;;  %vm507_vm6 = vcmask 254977  }
  0x31   :  { %1601 = vmatmul.msk.bf16.vlgmr.msra.gmra.mxu0 %vm224_vm0, %v2378_v4  ;;  %1606 = vmatmul.msk.bf16.vlgmr.msra.gmra.mxu1 %vm224_vm0, %v2378_v4  ;;  %v2397_v18 = vld [vmem:[%s2634_s4] ss:$0 sm:$0xff]  ;;  %v1796_v39 = vld [vmem:[#allocation11] sm:$0xff]  ;;  %vm943_vm7 = vcmask 261126   ;;  %s2238_s24 = smov [#allocation22]   ;;  %s1579_s27 = sshll.u32 %s2646_s16, 4  ;;  %s1580_s27 = int_to_ptr.hbm [resolvable:$true] %s1579_s27 }
  0x32   :  { %360 = vmatpush.bf16.msrb.mxu0 %v1793_v2  ;;  %396 = vmatpush.bf16.msrb.mxu1 %v1795_v3  ;;  %v1789_v37 = vld [vmem:[%s2642_s12] sm:$0xff]  ;;  %v1790_v2 = vld [vmem:[#allocation20] sm:$0xff]  ;;  %s1577_s25 = sshll.u32 %s2238_s24, 4  ;;  %s1578_s25 = int_to_ptr.vmem [resolvable:$true] %s1577_s25 }
  0x33   :  { %288 = vmatpush.bf16.msra.mxu2 %v1789_v37  ;;  %v1847_v46 = vld [vmem:[%s2643_s13] ss:$0 sm:$0xff]  ;;  %v1799_v3 = vld [vmem:[#allocation11 + $0x8] sm:$0xff]  ;;  %315 = vmatpush.bf16.msra.mxu3 %v1790_v2 }
  0x36   :  { %361 = vmatpush.bf16.msrb.mxu0 %v1792_v5  ;;  %397 = vmatpush.bf16.msrb.mxu1 %v1794_v7  ;;  %v1798_v5 = vld [vmem:[#allocation11] sm:$0xff] }
  0x37   :  { %466 = vmatpush.bf16.msrb.mxu2 %v1797_v38  ;;  %539 = vmatpush.bf16.msrb.mxu3 %v1799_v3 }
  0x38   :  { %1611 = vmatmul.msk.bf16.vlgmr.msra.gmra.mxu2 %vm224_vm0, %v2378_v4  ;;  %1616 = vmatmul.msk.bf16.vlgmr.msra.gmra.mxu3 %vm224_vm0, %v2378_v4 }
  0x3b   :  { %467 = vmatpush.bf16.msrb.mxu2 %v1796_v39  ;;  %540 = vmatpush.bf16.msrb.mxu3 %v1798_v5 }
  0x41   :  { %1629 = vmatmul.msk.bf16.vlgmr.msrb.gmra.mxu0 %vm350_vm1, %v1791_v6 }
  0xae   :  { %v237_v10 = vpop.f32.mrf.mxu0  ;;  %v264_v11 = vpop.f32.mrf.mxu1 }
  0xaf   :  { %v238_v12 = vadd.f32 %v1844_v8, %v237_v10  ;;  %v265_v13 = vadd.f32 %v1845_v9, %v264_v11 }
  0xb1   :  { %242 = vst.msk [vmem:[#allocation2] sm:$0x3] %vm241_vm2, %v238_v12 }
  0xb2   :  { %268 = vst.msk [vmem:[#allocation3] sm:$0x3] %vm241_vm2, %v265_v13  ;;  %v1848_v13 = vld [vmem:[%s2645_s15] ss:$0 sm:$0xff]  ;;  %s2237_s15 = smov 96  }
  0xb6   :  { %v239_v14 = vpop.f32.mrf.mxu0  ;;  %v266_v15 = vpop.f32.mrf.mxu1 }
  0xb8   :  { %v368_v16 = vld [vmem:[#allocation2] sm:$0x3] }
  0xb9   :  { %v370_v17 = vpack.c.bf16 %v368_v16, %v368_v16  ;;  %v369_v25 = vld [vmem:[#allocation3] sm:$0x3] }
  0xbb   :  { %1638 = vmatmul.msk.bf16.vlgmr.msrb.gmra.mxu1 %vm350_vm1, %v370_v17  ;;  %v290_v47 = vpop.f32.mrf.mxu2  ;;  %v317_v14 = vpop.f32.mrf.mxu3 }
  0xbc   :  { %v291_v48 = vadd.f32 %v1847_v46, %v290_v47  ;;  %v318_v4 = vadd.f32 %v1848_v13, %v317_v14 }
  0xbe   :  { %v363_v19 = vpop.f32.mrf.mxu0  ;;  %295 = vst.msk [vmem:[#allocation2 + $0x2] sm:$0x3] %vm241_vm2, %v291_v48 }
  0xbf   :  { %v2400_v20 = vadd.f32 %v2397_v18, %v363_v19  ;;  %322 = vst.msk [vmem:[#allocation3 + $0x2] sm:$0x3] %vm241_vm2, %v318_v4 }
  0xc3   :  { %v292_v49 = vpop.f32.mrf.mxu2  ;;  %v319_v15 = vpop.f32.mrf.mxu3 }
 0x138   :  { %v399_v21 = vpop.f32.mrf.mxu1 }
 0x139   :  { %v403_v22 = vadd.f32 %v399_v21, %v2400_v20 }
 0x13b   :  { %1850 = vtanh.f32 %v403_v22  ;;  %v404_v26 = vmul.f32 0.5, %v403_v22 }
 0x13d   :  { %1852 = vtanh.f32 %v404_v26 }
 0x140   :  { %v401_v23 = vpop.f32.mrf.mxu1 }
 0x141   :  { %v1851_v24 = vpop.eup %1850 }
 0x142   :  { %415 = vrot.lane.b32.xlu0 %v1851_v24, %s2226_s1 }
 0x143   :  { %v1853_v27 = vpop.eup %1852 }
 0x144   :  { %v406_v28 = vadd.f32 1.0, %v1853_v27 }
 0x146   :  { %v407_v29 = vmul.f32 0.5, %v406_v28 }
 0x14a   :  { %410 = vrot.lane.b32.xlu0 %v369_v25, %s2236_s8 }
 0x1b4   :  { %v416_v30 = vpop.permute.xlu0 %415 }
 0x1b5   :  { %v418_v31 = vmul.f32 %v416_v30, %v407_v29 }
 0x1b7   :  { %420 = vrot.lane.b32.xlu1 %v418_v31, %s2236_s8 }
 0x1bc   :  { %v411_v32 = vpop.permute.xlu0 %410 }
 0x1bd   :  { %v413_v33 = vmul.f32 %v411_v32, %v407_v29 }
 0x229   :  { %v421_v34 = vpop.permute.xlu1 %420 }
 0x22a   :  { %v423_v35 = vadd.f32 %v421_v34, %v413_v33  ;;  %v1801_v34 = vld [vmem:[#allocation11 + $0x8] sm:$0xff] }
 0x22b   :  { %612 = vmatpush.bf16.msra.mxu0 %v1801_v34 }
 0x22c   :  { %1854 = vtanh.f32 %v423_v35  ;;  %v483_v61 = vrot.slane %v423_v35, 6  ;;  %v1800_v35 = vld [vmem:[#allocation11] sm:$0xff] }
 0x22f   :  { %613 = vmatpush.bf16.msra.mxu0 %v1800_v35 }
 0x232   :  { %v1855_v36 = vpop.eup %1854 }
 0x233   :  { %426 = vrot.lane.b32.xlu1 %v1855_v36, %s2226_s1 }
 0x2a5   :  { %v427_v40 = vpop.permute.xlu1 %426 }
 0x2a6   :  { %v429_v41 = vmul.f32 %v427_v40, %v407_v29 }
 0x2a8   :  { %v2412_v42 = vpack.c.bf16 %v429_v41, %v429_v41 }
 0x2aa   :  { %v441_v43 = vunpack.c.l.b16 %v2412_v42 }
 0x2ac   :  { %v442_v44 = vpack.c.b16 %v441_v43, %v441_v43 }
 0x2ae   :  { %443 = vrot.lane.b32.xlu2 %v442_v44, %s2236_s8  ;;  %v365_v44 = vpop.f32.mrf.mxu0 }
 0x308   :  { %v444_v45 = vpop.permute.xlu2 %443 }
 0x309   :  { %1647 = vmatmul.msk.bf16.vlgmr.msrb.gmra.mxu2 %vm350_vm1, %v444_v45 }
 0x38c   :  { %v469_v50 = vpop.f32.mrf.mxu2 }
 0x38d   :  { %v474_v51 = vrot.slane %v469_v50, 6 }
 0x38f   :  { %v476_v52 = vadd.f32 %v474_v51, %v2400_v20 }
 0x391   :  { %1856 = vtanh.f32 %v476_v52  ;;  %v477_v55 = vmul.f32 0.5, %v476_v52 }
 0x393   :  { %1858 = vtanh.f32 %v477_v55 }
 0x394   :  { %v471_v53 = vpop.f32.mrf.mxu2 }
 0x397   :  { %v1857_v54 = vpop.eup %1856 }
 0x398   :  { %487 = vrot.lane.b32.xlu2 %v1857_v54, %s2226_s1 }
 0x399   :  { %v1859_v56 = vpop.eup %1858 }
 0x39a   :  { %v479_v57 = vadd.f32 1.0, %v1859_v56 }
 0x39c   :  { %v480_v58 = vmul.f32 0.5, %v479_v57 }
 0x39e   :  { %v485_v62 = vmul.f32 %v483_v61, %v480_v58  ;;  %v1802_v61 = vld [vmem:[#allocation11] sm:$0xff] }
 0x3f2   :  { %v488_v59 = vpop.permute.xlu2 %487 }
 0x3f3   :  { %v490_v60 = vmul.f32 %v488_v59, %v480_v58 }
 0x3f5   :  { %492 = vrot.lane.b32.xlu0 %v490_v60, %s2236_s8  ;;  %v1803_v60 = vld [vmem:[#allocation11 + $0x8] sm:$0xff] }
 0x3f6   :  { %685 = vmatpush.bf16.msra.mxu1 %v1803_v60 }
 0x3fa   :  { %686 = vmatpush.bf16.msra.mxu1 %v1802_v61 }
 0x467   :  { %v493_v63 = vpop.permute.xlu0 %492 }
 0x468   :  { %v495_v0 = vadd.f32 %v493_v63, %v485_v62 }
 0x46a   :  { %1860 = vtanh.f32 %v495_v0  ;;  %v556_v29 = vrot.slane %v495_v0, 6 }
 0x470   :  { %v1861_v1 = vpop.eup %1860 }
 0x471   :  { %498 = vrot.lane.b32.xlu1 %v1861_v1, %s2226_s1 }
 0x4e3   :  { %v499_v6 = vpop.permute.xlu1 %498 }
 0x4e4   :  { %v501_v7 = vmul.f32 %v499_v6, %v480_v58  ;;  %v2455_v6 = vadd.f32 %v2397_v18, %v365_v44 }
 0x4e6   :  { %v2427_v8 = vpack.c.bf16 %v501_v7, %v501_v7 }
 0x4e8   :  { %v513_v9 = vunpack.c.l.b16 %v2427_v8 }
 0x4ea   :  { %v514_v10 = vpack.c.b16 %v513_v9, %v513_v9 }
 0x4ec   :  { %v515_v11 = vrot.slane %v514_v10, 1 }
 0x4ee   :  { %516 = vrot.lane.b32.xlu2 %v515_v11, %s2236_s8 }
 0x548   :  { %v517_v12 = vpop.permute.xlu2 %516 }
 0x549   :  { %1656 = vmatmul.msk.bf16.vlgmr.msrb.gmra.mxu3 %vm350_vm1, %v517_v12 }
 0x5cc   :  { %v542_v16 = vpop.f32.mrf.mxu3 }
 0x5cd   :  { %v547_v17 = vrot.slane %v542_v16, 4 }
 0x5cf   :  { %v549_v19 = vadd.f32 %v547_v17, %v2400_v20 }
 0x5d1   :  { %1862 = vtanh.f32 %v549_v19  ;;  %v550_v23 = vmul.f32 0.5, %v549_v19 }
 0x5d3   :  { %1864 = vtanh.f32 %v550_v23  ;;  %v1805_v23 = vld [vmem:[#allocation11 + $0x8] sm:$0xff] }
 0x5d4   :  { %v544_v21 = vpop.f32.mrf.mxu3  ;;  %753 = vmatpush.bf16.msra.mxu2 %v1805_v23 }
 0x5d7   :  { %v1863_v22 = vpop.eup %1862 }
 0x5d8   :  { %560 = vrot.lane.b32.xlu0 %v1863_v22, %s2226_s1 }
 0x5d9   :  { %v1865_v24 = vpop.eup %1864 }
 0x5da   :  { %v552_v25 = vadd.f32 1.0, %v1865_v24  ;;  %v1804_v24 = vld [vmem:[#allocation11] sm:$0xff] }
 0x5db   :  { %754 = vmatpush.bf16.msra.mxu2 %v1804_v24 }
 0x5dc   :  { %v553_v26 = vmul.f32 0.5, %v552_v25 }
 0x5de   :  { %v558_v30 = vmul.f32 %v556_v29, %v553_v26 }
 0x64a   :  { %v561_v27 = vpop.permute.xlu0 %560 }
 0x64b   :  { %v563_v28 = vmul.f32 %v561_v27, %v553_v26 }
 0x64d   :  { %565 = vrot.lane.b32.xlu1 %v563_v28, %s2236_s8 }
 0x6bf   :  { %v566_v31 = vpop.permute.xlu1 %565 }
 0x6c0   :  { %v568_v32 = vadd.f32 %v566_v31, %v558_v30  ;;  %v1814_v30 = vld [vmem:[#allocation17 + $0x8] sm:$0xff]  ;;  %v1813_v31 = vld [vmem:[#allocation17] sm:$0xff] }
 0x6c1   :  { %1024 = vmatpush.bf16.msrb.mxu2 %v1814_v30 }
 0x6c2   :  { %1866 = vtanh.f32 %v568_v32  ;;  %v629_v56 = vrot.slane %v568_v32, 6 }
 0x6c5   :  { %1025 = vmatpush.bf16.msrb.mxu2 %v1813_v31 }
 0x6c8   :  { %v1867_v33 = vpop.eup %1866 }
 0x6c9   :  { %571 = vrot.lane.b32.xlu2 %v1867_v33, %s2226_s1  ;;  %v995_v33 = vld [vmem:[#allocation2 + $0x2] sm:$0x3] }
 0x6ca   :  { %v998_v34 = vpack.c.bf16 %v995_v33, %v995_v33 }
 0x723   :  { %v572_v36 = vpop.permute.xlu2 %571 }
 0x724   :  { %v574_v37 = vmul.f32 %v572_v36, %v553_v26 }
 0x726   :  { %v2440_v38 = vpack.c.bf16 %v574_v37, %v574_v37 }
 0x728   :  { %v586_v39 = vunpack.c.l.b16 %v2440_v38 }
 0x72a   :  { %v587_v40 = vpack.c.b16 %v586_v39, %v586_v39 }
 0x72c   :  { %v588_v41 = vrot.slane %v587_v40, 2 }
 0x72e   :  { %589 = vrot.lane.b32.xlu0 %v588_v41, %s2236_s8 }
 0x7a0   :  { %v590_v43 = vpop.permute.xlu0 %589 }
 0x7a1   :  { %1665 = vmatmul.msk.bf16.vlgmr.msra.gmra.mxu0 %vm350_vm1, %v590_v43 }
 0x81e   :  { %v615_v45 = vpop.f32.mrf.mxu0 }
 0x81f   :  { %v620_v46 = vrot.slane %v615_v45, 2 }
 0x821   :  { %v622_v47 = vadd.f32 %v620_v46, %v2400_v20 }
 0x823   :  { %1868 = vtanh.f32 %v622_v47  ;;  %v623_v50 = vmul.f32 0.5, %v622_v47 }
 0x825   :  { %1870 = vtanh.f32 %v623_v50 }
 0x826   :  { %v617_v48 = vpop.f32.mrf.mxu0 }
 0x829   :  { %v1869_v49 = vpop.eup %1868 }
 0x82a   :  { %633 = vrot.lane.b32.xlu1 %v1869_v49, %s2226_s1 }
 0x82b   :  { %v1871_v51 = vpop.eup %1870 }
 0x82c   :  { %v625_v52 = vadd.f32 1.0, %v1871_v51 }
 0x82e   :  { %v626_v53 = vmul.f32 0.5, %v625_v52 }
 0x830   :  { %v631_v57 = vmul.f32 %v629_v56, %v626_v53  ;;  %v1806_v56 = vld [vmem:[#allocation11] sm:$0xff] }
 0x89c   :  { %v634_v54 = vpop.permute.xlu1 %633 }
 0x89d   :  { %v636_v55 = vmul.f32 %v634_v54, %v626_v53 }
 0x89f   :  { %638 = vrot.lane.b32.xlu2 %v636_v55, %s2236_s8  ;;  %v1807_v55 = vld [vmem:[#allocation11 + $0x8] sm:$0xff] }
 0x8a0   :  { %825 = vmatpush.bf16.msra.mxu3 %v1807_v55 }
 0x8a4   :  { %826 = vmatpush.bf16.msra.mxu3 %v1806_v56 }
 0x8f9   :  { %v639_v58 = vpop.permute.xlu2 %638 }
 0x8fa   :  { %v641_v59 = vadd.f32 %v639_v58, %v631_v57 }
 0x8fc   :  { %1872 = vtanh.f32 %v641_v59  ;;  %v699_v17 = vrot.slane %v641_v59, 6 }
 0x902   :  { %v1873_v20 = vpop.eup %1872 }
 0x903   :  { %644 = vrot.lane.b32.xlu0 %v1873_v20, %s2226_s1 }
 0x975   :  { %v645_v62 = vpop.permute.xlu0 %644 }
 0x976   :  { %v647_v63 = vmul.f32 %v645_v62, %v626_v53 }
 0x978   :  { %v2449_v0 = vpack.c.bf16 %v647_v63, %v647_v63 }
 0x97a   :  { %v659_v1 = vunpack.c.l.b16 %v2449_v0 }
 0x97c   :  { %v660_v2 = vpack.c.b16 %v659_v1, %v659_v1 }
 0x97e   :  { %v661_v3 = vrot.slane %v660_v2, 3 }
 0x980   :  { %662 = vrot.lane.b32.xlu1 %v661_v3, %s2236_s8 }
 0x9f2   :  { %v663_v5 = vpop.permute.xlu1 %662 }
 0x9f3   :  { %1674 = vmatmul.msk.bf16.vlgmr.msra.gmra.mxu1 %vm350_vm1, %v663_v5 }
 0xa70   :  { %v688_v7 = vpop.f32.mrf.mxu1 }
 0xa71   :  { %v692_v9 = vadd.f32 %v688_v7, %v2455_v6 }
 0xa73   :  { %1874 = vtanh.f32 %v692_v9  ;;  %v693_v12 = vmul.f32 0.5, %v692_v9 }
 0xa75   :  { %1876 = vtanh.f32 %v693_v12 }
 0xa78   :  { %v690_v10 = vpop.f32.mrf.mxu1 }
 0xa79   :  { %v1875_v11 = vpop.eup %1874 }
 0xa7a   :  { %703 = vrot.lane.b32.xlu2 %v1875_v11, %s2226_s1 }
 0xa7b   :  { %v1877_v13 = vpop.eup %1876 }
 0xa7c   :  { %v695_v14 = vadd.f32 1.0, %v1877_v13 }
 0xa7e   :  { %v696_v4 = vmul.f32 0.5, %v695_v14 }
 0xa80   :  { %v701_v18 = vmul.f32 %v699_v17, %v696_v4 }
 0xad4   :  { %v704_v15 = vpop.permute.xlu2 %703 }
 0xad5   :  { %v706_v16 = vmul.f32 %v704_v15, %v696_v4 }
 0xad7   :  { %708 = vrot.lane.b32.xlu0 %v706_v16, %s2236_s8 }
 0xb49   :  { %v709_v19 = vpop.permute.xlu0 %708 }
 0xb4a   :  { %v711_v21 = vadd.f32 %v709_v19, %v701_v18  ;;  %v1809_v18 = vld [vmem:[#allocation11 + $0x8] sm:$0xff]  ;;  %v1808_v19 = vld [vmem:[#allocation11] sm:$0xff] }
 0xb4b   :  { %897 = vmatpush.bf16.msrb.mxu0 %v1809_v18 }
 0xb4c   :  { %1878 = vtanh.f32 %v711_v21  ;;  %v770_v50 = vrot.slane %v711_v21, 6 }
 0xb4f   :  { %898 = vmatpush.bf16.msrb.mxu0 %v1808_v19 }
 0xb52   :  { %v1879_v22 = vpop.eup %1878 }
 0xb53   :  { %714 = vrot.lane.b32.xlu1 %v1879_v22, %s2226_s1 }
 0xbc5   :  { %v715_v25 = vpop.permute.xlu1 %714 }
 0xbc6   :  { %v717_v26 = vmul.f32 %v715_v25, %v696_v4 }
 0xbc8   :  { %v2461_v27 = vpack.c.bf16 %v717_v26, %v717_v26 }
 0xbca   :  { %v728_v28 = vunpack.c.l.b16 %v2461_v27 }
 0xbcc   :  { %v729_v29 = vpack.c.b16 %v728_v28, %v728_v28 }
 0xbce   :  { %730 = vrot.lane.b32.xlu2 %v729_v29, %s2236_s8 }
 0xc28   :  { %v731_v32 = vpop.permute.xlu2 %730 }
 0xc29   :  { %1683 = vmatmul.msk.bf16.vlgmr.msra.gmra.mxu2 %vm350_vm1, %v731_v32 }
 0xc39   :  { %1723 = vmatmul.msk.bf16.vlgmr.msrb.gmra.mxu2 %vm350_vm1, %v998_v34  ;;  %v997_v34 = vld [vmem:[#allocation3 + $0x2] sm:$0x3] }
 0xcac   :  { %v756_v35 = vpop.f32.mrf.mxu2 }
 0xcad   :  { %v761_v36 = vrot.slane %v756_v35, 6 }
 0xcaf   :  { %v763_v37 = vadd.f32 %v761_v36, %v2455_v6 }
 0xcb1   :  { %1880 = vtanh.f32 %v763_v37  ;;  %v764_v44 = vmul.f32 0.5, %v763_v37 }
 0xcb3   :  { %1882 = vtanh.f32 %v764_v44 }
 0xcb4   :  { %v758_v39 = vpop.f32.mrf.mxu2 }
 0xcb7   :  { %v1881_v40 = vpop.eup %1880 }
 0xcb8   :  { %774 = vrot.lane.b32.xlu0 %v1881_v40, %s2226_s1 }
 0xcb9   :  { %v1883_v45 = vpop.eup %1882 }
 0xcba   :  { %v766_v46 = vadd.f32 1.0, %v1883_v45 }
 0xcbc   :  { %v2469_v41 = vpop.f32.mrf.mxu2  ;;  %v767_v47 = vmul.f32 0.5, %v766_v46 }
 0xcbe   :  { %v772_v51 = vmul.f32 %v770_v50, %v767_v47 }
 0xcc4   :  { %v1029_v43 = vpop.f32.mrf.mxu2 }
 0xd2a   :  { %v775_v48 = vpop.permute.xlu0 %774 }
 0xd2b   :  { %v777_v49 = vmul.f32 %v775_v48, %v767_v47 }
 0xd2d   :  { %779 = vrot.lane.b32.xlu1 %v777_v49, %s2236_s8 }
 0xd9f   :  { %v780_v52 = vpop.permute.xlu1 %779 }
 0xda0   :  { %v782_v53 = vadd.f32 %v780_v52, %v772_v51 }
 0xda2   :  { %1884 = vtanh.f32 %v782_v53  ;;  %v842_v14 = vrot.slane %v782_v53, 6 }
 0xda8   :  { %v1885_v54 = vpop.eup %1884 }
 0xda9   :  { %785 = vrot.lane.b32.xlu2 %v1885_v54, %s2226_s1 }
 0xe03   :  { %v786_v57 = vpop.permute.xlu2 %785 }
 0xe04   :  { %v788_v58 = vmul.f32 %v786_v57, %v767_v47  ;;  %v2519_v57 = vld [vmem:[#allocation19] ss:$0 sm:$0xff] }
 0xe06   :  { %v2473_v59 = vpack.c.bf16 %v788_v58, %v788_v58 }
 0xe08   :  { %v799_v20 = vunpack.c.l.b16 %v2473_v59 }
 0xe0a   :  { %v800_v60 = vpack.c.b16 %v799_v20, %v799_v20 }
 0xe0c   :  { %v801_v61 = vrot.slane %v800_v60, 1 }
 0xe0e   :  { %802 = vrot.lane.b32.xlu0 %v801_v61, %s2236_s8 }
 0xe80   :  { %v803_v62 = vpop.permute.xlu0 %802 }
 0xe81   :  { %1692 = vmatmul.msk.bf16.vlgmr.msra.gmra.mxu3 %vm350_vm1, %v803_v62 }
 0xf04   :  { %v828_v63 = vpop.f32.mrf.mxu3 }
 0xf05   :  { %v833_v1 = vrot.slane %v828_v63, 4 }
 0xf07   :  { %v835_v2 = vadd.f32 %v833_v1, %v2455_v6 }
 0xf09   :  { %1886 = vtanh.f32 %v835_v2  ;;  %v836_v7 = vmul.f32 0.5, %v835_v2 }
 0xf0b   :  { %1888 = vtanh.f32 %v836_v7 }
 0xf0c   :  { %v830_v3 = vpop.f32.mrf.mxu3 }
 0xf0f   :  { %v1887_v5 = vpop.eup %1886 }
 0xf10   :  { %846 = vrot.lane.b32.xlu1 %v1887_v5, %s2226_s1 }
 0xf11   :  { %v1889_v9 = vpop.eup %1888 }
 0xf12   :  { %v838_v10 = vadd.f32 1.0, %v1889_v9 }
 0xf14   :  { %v839_v11 = vmul.f32 0.5, %v838_v10 }
 0xf16   :  { %v844_v4 = vmul.f32 %v842_v14, %v839_v11 }
 0xf82   :  { %v847_v12 = vpop.permute.xlu1 %846 }
 0xf83   :  { %v849_v13 = vmul.f32 %v847_v12, %v839_v11  ;;  %v1815_v12 = vld [vmem:[#allocation17] sm:$0xff] }
 0xf85   :  { %851 = vrot.lane.b32.xlu2 %v849_v13, %s2236_s8 }
 0xfdf   :  { %v852_v15 = vpop.permute.xlu2 %851 }
 0xfe0   :  { %v854_v16 = vadd.f32 %v852_v15, %v844_v4 }
 0xfe2   :  { %1890 = vtanh.f32 %v854_v16  ;;  %v914_v44 = vrot.slane %v854_v16, 6 }
 0xfe8   :  { %v1891_v17 = vpop.eup %1890 }
 0xfe9   :  { %857 = vrot.lane.b32.xlu0 %v1891_v17, %s2226_s1 }
0x105b   :  { %v858_v21 = vpop.permute.xlu0 %857 }
0x105c   :  { %v860_v22 = vmul.f32 %v858_v21, %v839_v11 }
0x105e   :  { %v861_v23 = vpack.c.bf16 %v860_v22, %v860_v22 }
0x1060   :  { %v871_v24 = vunpack.c.l.b16 %v861_v23 }
0x1062   :  { %v872_v25 = vpack.c.b16 %v871_v24, %v871_v24 }
0x1064   :  { %v873_v26 = vrot.slane %v872_v25, 2 }
0x1066   :  { %874 = vrot.lane.b32.xlu1 %v873_v26, %s2236_s8 }
0x10d8   :  { %v875_v28 = vpop.permute.xlu1 %874 }
0x10d9   :  { %1701 = vmatmul.msk.bf16.vlgmr.msrb.gmra.mxu0 %vm350_vm1, %v875_v28 }
0x1156   :  { %v900_v29 = vpop.f32.mrf.mxu0 }
0x1157   :  { %v905_v30 = vrot.slane %v900_v29, 2 }
0x1159   :  { %v907_v31 = vadd.f32 %v905_v30, %v2455_v6 }
0x115b   :  { %1892 = vtanh.f32 %v907_v31  ;;  %v908_v35 = vmul.f32 0.5, %v907_v31 }
0x115d   :  { %1894 = vtanh.f32 %v908_v35 }
0x115e   :  { %v902_v32 = vpop.f32.mrf.mxu0 }
0x1161   :  { %v1893_v33 = vpop.eup %1892 }
0x1162   :  { %918 = vrot.lane.b32.xlu2 %v1893_v33, %s2226_s1 }
0x1163   :  { %v1895_v36 = vpop.eup %1894 }
0x1164   :  { %v910_v6 = vadd.f32 1.0, %v1895_v36  ;;  %v1818_v36 = vld [vmem:[#allocation17 + $0x8] sm:$0xff] }
0x1165   :  { %1165 = vmatpush.bf16.msra.mxu0 %v1818_v36 }
0x1166   :  { %v911_v37 = vmul.f32 0.5, %v910_v6  ;;  %v1817_v6 = vld [vmem:[#allocation17] sm:$0xff] }
0x1168   :  { %v916_v45 = vmul.f32 %v914_v44, %v911_v37 }
0x1169   :  { %1166 = vmatpush.bf16.msra.mxu0 %v1817_v6 }
0x116a   :  { %432 = vrot.lane.b32.xlu2 %v2412_v42, %s2236_s8 }
0x1172   :  { %650 = vrot.lane.b32.xlu2 %v2449_v0, %s2236_s8 }
0x117a   :  { %863 = vrot.lane.b32.xlu2 %v861_v23, %s2236_s8 }
0x1182   :  { %1038 = vrot.lane.b32.xlu2 %v997_v34, %s2236_s8 }
0x11bc   :  { %v919_v39 = vpop.permute.xlu2 %918 }
0x11bd   :  { %v921_v40 = vmul.f32 %v919_v39, %v911_v37 }
0x11bf   :  { %923 = vrot.lane.b32.xlu0 %v921_v40, %s2236_s8 }
0x11c4   :  { %v433_v43 = vpop.permute.xlu2 %432 }
0x11c5   :  { %436 = vst.msk [vmem:[#allocation4] sm:$0x1] %vm435_vm3, %v433_v43 }
0x11c7   :  { %504 = vrot.lane.b32.xlu0 %v2427_v8, %s2236_s8 }
0x11cc   :  { %v651_v42 = vpop.permute.xlu2 %650 }
0x11cd   :  { %654 = vst.msk [vmem:[#allocation4] sm:$0x8] %vm653_vm4, %v651_v42 }
0x11cf   :  { %720 = vrot.lane.b32.xlu0 %v2461_v27, %s2236_s8  ;;  %v1812_v27 = vld [vmem:[#allocation16 + $0x8] sm:$0xff] }
0x11d0   :  { %986 = vmatpush.bf16.msrb.mxu1 %v1812_v27 }
0x11d4   :  { %v864_v0 = vpop.permute.xlu2 %863 }
0x11d5   :  { %866 = vst.msk [vmem:[#allocation4 + $0x4] sm:$0x4] %vm580_vm5, %v864_v0 }
0x11dc   :  { %v1039_v5 = vpop.permute.xlu2 %1038 }
0x1231   :  { %v924_v46 = vpop.permute.xlu0 %923 }
0x1232   :  { %v2500_v47 = vadd.f32 %v924_v46, %v916_v45 }
0x1234   :  { %1896 = vtanh.f32 %v2500_v47 }
0x1239   :  { %v505_v8 = vpop.permute.xlu0 %504 }
0x123a   :  { %v1897_v48 = vpop.eup %1896  ;;  %508 = vst.msk [vmem:[#allocation4] sm:$0x2] %vm507_vm6, %v505_v8 }
0x123b   :  { %929 = vrot.lane.b32.xlu1 %v1897_v48, %s2226_s1 }
0x1241   :  { %v721_v49 = vpop.permute.xlu0 %720 }
0x1242   :  { %723 = vst.msk [vmem:[#allocation4 + $0x4] sm:$0x1] %vm435_vm3, %v721_v49 }
0x1243   :  { %577 = vrot.lane.b32.xlu1 %v2440_v38, %s2236_s8  ;;  %v1811_v38 = vld [vmem:[#allocation16] sm:$0xff] }
0x1244   :  { %987 = vmatpush.bf16.msrb.mxu1 %v1811_v38 }
0x124b   :  { %791 = vrot.lane.b32.xlu1 %v2473_v59, %s2236_s8 }
0x12ad   :  { %v930_v50 = vpop.permute.xlu1 %929 }
0x12ae   :  { %v2510_v51 = vmul.f32 %v930_v50, %v911_v37 }
0x12b0   :  { %v933_v52 = vpack.c.bf16 %v2510_v51, %v2510_v51 }
0x12b2   :  { %935 = vrot.lane.b32.xlu0 %v933_v52, %s2236_s8 }
0x12b5   :  { %v578_v53 = vpop.permute.xlu1 %577 }
0x12b6   :  { %581 = vst.msk [vmem:[#allocation4] sm:$0x4] %vm580_vm5, %v578_v53 }
0x12bd   :  { %v792_v54 = vpop.permute.xlu1 %791 }
0x12be   :  { %794 = vst.msk [vmem:[#allocation4 + $0x4] sm:$0x2] %vm507_vm6, %v792_v54 }
0x1324   :  { %v936_v55 = vpop.permute.xlu0 %935 }
0x1325   :  { %938 = vst.msk [vmem:[#allocation4 + $0x4] sm:$0x8] %vm653_vm4, %v936_v55 }
0x132c   :  { %v1810_v56 = vld [vmem:[#allocation4] sm:$0xff] }
0x132d   :  { %1714 = vmatmul.msk.bf16.vlgmr.msrb.gmra.mxu1 %vm350_vm1, %v1810_v56 }
0x13aa   :  { %v989_v58 = vpop.f32.mrf.mxu1 }
0x13ab   :  { %v2522_v59 = vadd.f32 %v2519_v57, %v989_v58 }
0x13ad   :  { %v1031_v20 = vadd.f32 %v2469_v41, %v2522_v59  ;;  %v1816_v41 = vld [vmem:[#allocation17 + $0x8] sm:$0xff] }
0x13ae   :  { %1093 = vmatpush.bf16.msrb.mxu3 %v1816_v41 }
0x13af   :  { %1898 = vtanh.f32 %v1031_v20  ;;  %v1032_v61 = vmul.f32 0.5, %v1031_v20 }
0x13b1   :  { %1900 = vtanh.f32 %v1032_v61  ;;  %v1820_v61 = vld [vmem:[#allocation17 + $0x8] sm:$0xff] }
0x13b2   :  { %1094 = vmatpush.bf16.msrb.mxu3 %v1815_v12  ;;  %1237 = vmatpush.bf16.msra.mxu1 %v1820_v61 }
0x13b5   :  { %v1899_v60 = vpop.eup %1898 }
0x13b6   :  { %1043 = vrot.lane.b32.xlu1 %v1899_v60, %s2226_s1 }
0x13b7   :  { %v1901_v62 = vpop.eup %1900 }
0x13b8   :  { %v1034_v63 = vadd.f32 1.0, %v1901_v62  ;;  %v1819_v62 = vld [vmem:[#allocation17] sm:$0xff] }
0x13b9   :  { %1238 = vmatpush.bf16.msra.mxu1 %v1819_v62 }
0x13ba   :  { %v1035_v1 = vmul.f32 0.5, %v1034_v63 }
0x13bc   :  { %v1041_v7 = vmul.f32 %v1039_v5, %v1035_v1 }
0x1428   :  { %v1044_v2 = vpop.permute.xlu1 %1043 }
0x1429   :  { %v1046_v3 = vmul.f32 %v1044_v2, %v1035_v1 }
0x142b   :  { %1048 = vrot.lane.b32.xlu0 %v1046_v3, %s2236_s8 }
0x149d   :  { %v1049_v9 = vpop.permute.xlu0 %1048 }
0x149e   :  { %v1051_v10 = vadd.f32 %v1049_v9, %v1041_v7 }
0x14a0   :  { %1902 = vtanh.f32 %v1051_v10  ;;  %v1110_v31 = vrot.slane %v1051_v10, 6  ;;  %v991_v10 = vpop.f32.mrf.mxu1 }
0x14a1   :  { %v2562_v36 = vadd.f32 %v2519_v57, %v991_v10 }
0x14a6   :  { %v1903_v11 = vpop.eup %1902 }
0x14a7   :  { %1054 = vrot.lane.b32.xlu1 %v1903_v11, %s2226_s1 }
0x1519   :  { %v1055_v13 = vpop.permute.xlu1 %1054 }
0x151a   :  { %v1057_v14 = vmul.f32 %v1055_v13, %v1035_v1 }
0x151c   :  { %v2529_v4 = vpack.c.bf16 %v1057_v14, %v1057_v14 }
0x151e   :  { %v1068_v15 = vunpack.c.l.b16 %v2529_v4 }
0x1520   :  { %v1069_v16 = vpack.c.b16 %v1068_v15, %v1068_v15 }
0x1522   :  { %1070 = vrot.lane.b32.xlu2 %v1069_v16, %s2236_s8 }
0x157c   :  { %v1071_v17 = vpop.permute.xlu2 %1070 }
0x157d   :  { %1732 = vmatmul.msk.bf16.vlgmr.msrb.gmra.mxu3 %vm350_vm1, %v1071_v17 }
0x1600   :  { %v1096_v18 = vpop.f32.mrf.mxu3 }
0x1601   :  { %v1101_v19 = vrot.slane %v1096_v18, 6 }
0x1603   :  { %v1103_v21 = vadd.f32 %v1101_v19, %v2522_v59 }
0x1605   :  { %1904 = vtanh.f32 %v1103_v21  ;;  %v1104_v24 = vmul.f32 0.5, %v1103_v21 }
0x1607   :  { %1906 = vtanh.f32 %v1104_v24 }
0x1608   :  { %v1098_v22 = vpop.f32.mrf.mxu3 }
0x160b   :  { %v1905_v23 = vpop.eup %1904 }
0x160c   :  { %1114 = vrot.lane.b32.xlu0 %v1905_v23, %s2226_s1 }
0x160d   :  { %v1907_v25 = vpop.eup %1906 }
0x160e   :  { %v1106_v26 = vadd.f32 1.0, %v1907_v25 }
0x1610   :  { %v1107_v28 = vmul.f32 0.5, %v1106_v26  ;;  %v1822_v26 = vld [vmem:[#allocation17 + $0x8] sm:$0xff] }
0x1611   :  { %1309 = vmatpush.bf16.msra.mxu2 %v1822_v26 }
0x1612   :  { %v1112_v32 = vmul.f32 %v1110_v31, %v1107_v28 }
0x167e   :  { %v1115_v29 = vpop.permute.xlu0 %1114 }
0x167f   :  { %v1117_v30 = vmul.f32 %v1115_v29, %v1107_v28 }
0x1681   :  { %1119 = vrot.lane.b32.xlu1 %v1117_v30, %s2236_s8 }
0x16f3   :  { %v1120_v33 = vpop.permute.xlu1 %1119 }
0x16f4   :  { %v1122_v34 = vadd.f32 %v1120_v33, %v1112_v32 }
0x16f6   :  { %1908 = vtanh.f32 %v1122_v34  ;;  %v1182_v55 = vrot.slane %v1122_v34, 6 }
0x16fc   :  { %v1909_v35 = vpop.eup %1908 }
0x16fd   :  { %1125 = vrot.lane.b32.xlu2 %v1909_v35, %s2226_s1 }
0x1757   :  { %v1126_v37 = vpop.permute.xlu2 %1125 }
0x1758   :  { %v1128_v39 = vmul.f32 %v1126_v37, %v1107_v28  ;;  %v1821_v28 = vld [vmem:[#allocation17] sm:$0xff] }
0x1759   :  { %1310 = vmatpush.bf16.msra.mxu2 %v1821_v28 }
0x175a   :  { %v2538_v40 = vpack.c.bf16 %v1128_v39, %v1128_v39 }
0x175c   :  { %v1139_v43 = vunpack.c.l.b16 %v2538_v40 }
0x175e   :  { %v1140_v42 = vpack.c.b16 %v1139_v43, %v1139_v43 }
0x1760   :  { %v1141_v0 = vrot.slane %v1140_v42, 1 }
0x1762   :  { %1142 = vrot.lane.b32.xlu0 %v1141_v0, %s2236_s8 }
0x17d4   :  { %v1143_v44 = vpop.permute.xlu0 %1142 }
0x17d5   :  { %1741 = vmatmul.msk.bf16.vlgmr.msra.gmra.mxu0 %vm350_vm1, %v1143_v44 }
0x1852   :  { %v1168_v45 = vpop.f32.mrf.mxu0 }
0x1853   :  { %v1173_v46 = vrot.slane %v1168_v45, 4 }
0x1855   :  { %v1175_v8 = vadd.f32 %v1173_v46, %v2522_v59 }
0x1857   :  { %1910 = vtanh.f32 %v1175_v8  ;;  %v1176_v27 = vmul.f32 0.5, %v1175_v8 }
0x1859   :  { %1912 = vtanh.f32 %v1176_v27 }
0x185a   :  { %v1170_v48 = vpop.f32.mrf.mxu0 }
0x185d   :  { %v1911_v49 = vpop.eup %1910 }
0x185e   :  { %1186 = vrot.lane.b32.xlu1 %v1911_v49, %s2226_s1 }
0x185f   :  { %v1913_v50 = vpop.eup %1912 }
0x1860   :  { %v1178_v52 = vadd.f32 1.0, %v1913_v50 }
0x1862   :  { %v1179_v53 = vmul.f32 0.5, %v1178_v52  ;;  %v1824_v52 = vld [vmem:[#allocation17 + $0x8] sm:$0xff] }
0x1863   :  { %1377 = vmatpush.bf16.msra.mxu3 %v1824_v52 }
0x1864   :  { %v1184_v56 = vmul.f32 %v1182_v55, %v1179_v53 }
0x18d0   :  { %v1187_v54 = vpop.permute.xlu1 %1186 }
0x18d1   :  { %v1189_v38 = vmul.f32 %v1187_v54, %v1179_v53 }
0x18d3   :  { %1191 = vrot.lane.b32.xlu2 %v1189_v38, %s2236_s8 }
0x192d   :  { %v1192_v58 = vpop.permute.xlu2 %1191 }
0x192e   :  { %v1194_v20 = vadd.f32 %v1192_v58, %v1184_v56 }
0x1930   :  { %1914 = vtanh.f32 %v1194_v20  ;;  %v1254_v22 = vrot.slane %v1194_v20, 6 }
0x1936   :  { %v1915_v60 = vpop.eup %1914 }
0x1937   :  { %1197 = vrot.lane.b32.xlu0 %v1915_v60, %s2226_s1 }
0x19a9   :  { %v1198_v63 = vpop.permute.xlu0 %1197 }
0x19aa   :  { %v1200_v1 = vmul.f32 %v1198_v63, %v1179_v53  ;;  %v1823_v53 = vld [vmem:[#allocation17] sm:$0xff] }
0x19ab   :  { %1378 = vmatpush.bf16.msra.mxu3 %v1823_v53 }
0x19ac   :  { %v2547_v2 = vpack.c.bf16 %v1200_v1, %v1200_v1 }
0x19ae   :  { %v1211_v3 = vunpack.c.l.b16 %v2547_v2 }
0x19b0   :  { %v1212_v5 = vpack.c.b16 %v1211_v3, %v1211_v3 }
0x19b2   :  { %v1213_v7 = vrot.slane %v1212_v5, 2 }
0x19b4   :  { %1214 = vrot.lane.b32.xlu1 %v1213_v7, %s2236_s8 }
0x1a26   :  { %v1215_v9 = vpop.permute.xlu1 %1214 }
0x1a27   :  { %1750 = vmatmul.msk.bf16.vlgmr.msra.gmra.mxu1 %vm350_vm1, %v1215_v9 }
0x1aa4   :  { %v1240_v11 = vpop.f32.mrf.mxu1 }
0x1aa5   :  { %v1245_v41 = vrot.slane %v1240_v11, 2 }
0x1aa7   :  { %v1247_v12 = vadd.f32 %v1245_v41, %v2522_v59 }
0x1aa9   :  { %1916 = vtanh.f32 %v1247_v12  ;;  %v1248_v15 = vmul.f32 0.5, %v1247_v12 }
0x1aab   :  { %1918 = vtanh.f32 %v1248_v15 }
0x1aac   :  { %v1242_v13 = vpop.f32.mrf.mxu1 }
0x1aaf   :  { %v1917_v14 = vpop.eup %1916 }
0x1ab0   :  { %1258 = vrot.lane.b32.xlu2 %v1917_v14, %s2226_s1 }
0x1ab1   :  { %v1919_v16 = vpop.eup %1918 }
0x1ab2   :  { %v1250_v17 = vadd.f32 1.0, %v1919_v16  ;;  %v1826_v16 = vld [vmem:[#allocation17 + $0x8] sm:$0xff] }
0x1ab3   :  { %1449 = vmatpush.bf16.msrb.mxu0 %v1826_v16 }
0x1ab4   :  { %v1251_v18 = vmul.f32 0.5, %v1250_v17  ;;  %v1825_v17 = vld [vmem:[#allocation17] sm:$0xff] }
0x1ab6   :  { %v1256_v23 = vmul.f32 %v1254_v22, %v1251_v18 }
0x1ab7   :  { %1450 = vmatpush.bf16.msrb.mxu0 %v1825_v17 }
0x1b0a   :  { %v1259_v19 = vpop.permute.xlu2 %1258 }
0x1b0b   :  { %v1261_v21 = vmul.f32 %v1259_v19, %v1251_v18 }
0x1b0d   :  { %1263 = vrot.lane.b32.xlu0 %v1261_v21, %s2236_s8 }
0x1b7f   :  { %v1264_v24 = vpop.permute.xlu0 %1263 }
0x1b80   :  { %v1266_v25 = vadd.f32 %v1264_v24, %v1256_v23 }
0x1b82   :  { %1920 = vtanh.f32 %v1266_v25  ;;  %v1323_v48 = vrot.slane %v1266_v25, 6 }
0x1b88   :  { %v1921_v59 = vpop.eup %1920 }
0x1b89   :  { %1269 = vrot.lane.b32.xlu1 %v1921_v59, %s2226_s1 }
0x1bfb   :  { %v1270_v29 = vpop.permute.xlu1 %1269 }
0x1bfc   :  { %v1272_v30 = vmul.f32 %v1270_v29, %v1251_v18 }
0x1bfe   :  { %v2556_v31 = vpack.c.bf16 %v1272_v30, %v1272_v30 }
0x1c00   :  { %v1283_v32 = vunpack.c.l.b16 %v2556_v31 }
0x1c02   :  { %v1284_v33 = vpack.c.b16 %v1283_v32, %v1283_v32 }
0x1c04   :  { %v1285_v34 = vrot.slane %v1284_v33, 3 }
0x1c06   :  { %1286 = vrot.lane.b32.xlu2 %v1285_v34, %s2236_s8 }
0x1c60   :  { %v1287_v35 = vpop.permute.xlu2 %1286 }
0x1c61   :  { %1759 = vmatmul.msk.bf16.vlgmr.msra.gmra.mxu2 %vm350_vm1, %v1287_v35 }
0x1ce4   :  { %v1312_v6 = vpop.f32.mrf.mxu2 }
0x1ce5   :  { %v1316_v37 = vadd.f32 %v1312_v6, %v2562_v36 }
0x1ce7   :  { %1922 = vtanh.f32 %v1316_v37  ;;  %v1317_v42 = vmul.f32 0.5, %v1316_v37 }
0x1ce9   :  { %1924 = vtanh.f32 %v1317_v42 }
0x1cec   :  { %v1314_v39 = vpop.f32.mrf.mxu2 }
0x1ced   :  { %v1923_v43 = vpop.eup %1922 }
0x1cee   :  { %1327 = vrot.lane.b32.xlu0 %v1923_v43, %s2226_s1 }
0x1cef   :  { %v1925_v0 = vpop.eup %1924 }
0x1cf0   :  { %v1319_v44 = vadd.f32 1.0, %v1925_v0 }
0x1cf2   :  { %v1320_v45 = vmul.f32 0.5, %v1319_v44 }
0x1cf4   :  { %v1325_v57 = vmul.f32 %v1323_v48, %v1320_v45 }
0x1d60   :  { %v1328_v46 = vpop.permute.xlu0 %1327 }
0x1d61   :  { %v1330_v8 = vmul.f32 %v1328_v46, %v1320_v45  ;;  %v1827_v46 = vld [vmem:[#allocation17] sm:$0xff] }
0x1d63   :  { %1332 = vrot.lane.b32.xlu1 %v1330_v8, %s2236_s8 }
0x1dd5   :  { %v1333_v49 = vpop.permute.xlu1 %1332 }
0x1dd6   :  { %v1335_v27 = vadd.f32 %v1333_v49, %v1325_v57 }
0x1dd8   :  { %1926 = vtanh.f32 %v1335_v27  ;;  %v1394_v41 = vrot.slane %v1335_v27, 6 }
0x1dde   :  { %v1927_v50 = vpop.eup %1926 }
0x1ddf   :  { %1338 = vrot.lane.b32.xlu2 %v1927_v50, %s2226_s1 }
0x1e39   :  { %v1339_v54 = vpop.permute.xlu2 %1338 }
0x1e3a   :  { %v1341_v38 = vmul.f32 %v1339_v54, %v1320_v45  ;;  %v1828_v45 = vld [vmem:[#allocation17 + $0x8] sm:$0xff] }
0x1e3b   :  { %1521 = vmatpush.bf16.msrb.mxu1 %v1828_v45 }
0x1e3c   :  { %v2568_v55 = vpack.c.bf16 %v1341_v38, %v1341_v38 }
0x1e3e   :  { %v1352_v56 = vunpack.c.l.b16 %v2568_v55 }
0x1e3f   :  { %1522 = vmatpush.bf16.msrb.mxu1 %v1827_v46 }
0x1e40   :  { %v1353_v58 = vpack.c.b16 %v1352_v56, %v1352_v56 }
0x1e42   :  { %1354 = vrot.lane.b32.xlu0 %v1353_v58, %s2236_s8 }
0x1eb4   :  { %v1355_v20 = vpop.permute.xlu0 %1354 }
0x1eb5   :  { %1768 = vmatmul.msk.bf16.vlgmr.msra.gmra.mxu3 %vm350_vm1, %v1355_v20 }
0x1f38   :  { %v1380_v60 = vpop.f32.mrf.mxu3 }
0x1f39   :  { %v1385_v61 = vrot.slane %v1380_v60, 6 }
0x1f3b   :  { %v1387_v62 = vadd.f32 %v1385_v61, %v2562_v36 }
0x1f3d   :  { %1928 = vtanh.f32 %v1387_v62  ;;  %v1388_v3 = vmul.f32 0.5, %v1387_v62 }
0x1f3f   :  { %1930 = vtanh.f32 %v1388_v3 }
0x1f40   :  { %v1382_v63 = vpop.f32.mrf.mxu3 }
0x1f43   :  { %v1929_v1 = vpop.eup %1928 }
0x1f44   :  { %1398 = vrot.lane.b32.xlu1 %v1929_v1, %s2226_s1 }
0x1f45   :  { %v1931_v5 = vpop.eup %1930 }
0x1f46   :  { %v1390_v7 = vadd.f32 1.0, %v1931_v5 }
0x1f48   :  { %v1391_v9 = vmul.f32 0.5, %v1390_v7 }
0x1f4a   :  { %v1396_v12 = vmul.f32 %v1394_v41, %v1391_v9 }
0x1fb6   :  { %v1399_v10 = vpop.permute.xlu1 %1398 }
0x1fb7   :  { %v1401_v11 = vmul.f32 %v1399_v10, %v1391_v9 }
0x1fb9   :  { %1403 = vrot.lane.b32.xlu2 %v1401_v11, %s2236_s8 }
0x2013   :  { %v1404_v13 = vpop.permute.xlu2 %1403 }
0x2014   :  { %v1406_v14 = vadd.f32 %v1404_v13, %v1396_v12 }
0x2016   :  { %1932 = vtanh.f32 %v1406_v14  ;;  %v1466_v39 = vrot.slane %v1406_v14, 6 }
0x201c   :  { %v1933_v15 = vpop.eup %1932 }
0x201d   :  { %1409 = vrot.lane.b32.xlu0 %v1933_v15, %s2226_s1 }
0x208f   :  { %v1410_v18 = vpop.permute.xlu0 %1409 }
0x2090   :  { %v1412_v19 = vmul.f32 %v1410_v18, %v1391_v9 }
0x2092   :  { %v2577_v21 = vpack.c.bf16 %v1412_v19, %v1412_v19 }
0x2094   :  { %v1423_v22 = vunpack.c.l.b16 %v2577_v21 }
0x2096   :  { %v1424_v23 = vpack.c.b16 %v1423_v22, %v1423_v22 }
0x2098   :  { %v1425_v24 = vrot.slane %v1424_v23, 1 }
0x209a   :  { %1426 = vrot.lane.b32.xlu1 %v1425_v24, %s2236_s8 }
0x210c   :  { %v1427_v25 = vpop.permute.xlu1 %1426 }
0x210d   :  { %1777 = vmatmul.msk.bf16.vlgmr.msrb.gmra.mxu0 %vm350_vm1, %v1427_v25 }
0x218a   :  { %v1452_v59 = vpop.f32.mrf.mxu0 }
0x218b   :  { %v1457_v26 = vrot.slane %v1452_v59, 4 }
0x218d   :  { %v1459_v28 = vadd.f32 %v1457_v26, %v2562_v36 }
0x218f   :  { %1934 = vtanh.f32 %v1459_v28  ;;  %v1460_v32 = vmul.f32 0.5, %v1459_v28 }
0x2191   :  { %1936 = vtanh.f32 %v1460_v32 }
0x2192   :  { %v1454_v29 = vpop.f32.mrf.mxu0 }
0x2195   :  { %v1935_v30 = vpop.eup %1934 }
0x2196   :  { %1470 = vrot.lane.b32.xlu2 %v1935_v30, %s2226_s1 }
0x2197   :  { %v1937_v33 = vpop.eup %1936 }
0x2198   :  { %v1462_v34 = vadd.f32 1.0, %v1937_v33 }
0x219a   :  { %v1463_v35 = vmul.f32 0.5, %v1462_v34 }
0x219c   :  { %v1468_v43 = vmul.f32 %v1466_v39, %v1463_v35 }
0x21f0   :  { %v1471_v6 = vpop.permute.xlu2 %1470 }
0x21f1   :  { %v1473_v37 = vmul.f32 %v1471_v6, %v1463_v35 }
0x21f3   :  { %1475 = vrot.lane.b32.xlu0 %v1473_v37, %s2236_s8 }
0x2265   :  { %v1476_v42 = vpop.permute.xlu0 %1475 }
0x2266   :  { %v1478_v0 = vadd.f32 %v1476_v42, %v1468_v43 }
0x2268   :  { %1938 = vtanh.f32 %v1478_v0  ;;  %v1538_v3 = vrot.slane %v1478_v0, 6 }
0x226e   :  { %v1939_v44 = vpop.eup %1938 }
0x226f   :  { %1481 = vrot.lane.b32.xlu1 %v1939_v44, %s2226_s1 }
0x22e1   :  { %v1482_v8 = vpop.permute.xlu1 %1481 }
0x22e2   :  { %v1484_v48 = vmul.f32 %v1482_v8, %v1463_v35 }
0x22e4   :  { %v1485_v57 = vpack.c.bf16 %v1484_v48, %v1484_v48 }
0x22e6   :  { %v1495_v49 = vunpack.c.l.b16 %v1485_v57 }
0x22e8   :  { %v1496_v27 = vpack.c.b16 %v1495_v49, %v1495_v49 }
0x22ea   :  { %v1497_v50 = vrot.slane %v1496_v27, 2 }
0x22ec   :  { %1498 = vrot.lane.b32.xlu2 %v1497_v50, %s2236_s8 }
0x2346   :  { %v1499_v52 = vpop.permute.xlu2 %1498 }
0x2347   :  { %1786 = vmatmul.msk.bf16.vlgmr.msrb.gmra.mxu1 %vm350_vm1, %v1499_v52 }
0x23c4   :  { %v1524_v53 = vpop.f32.mrf.mxu1 }
0x23c5   :  { %v1529_v54 = vrot.slane %v1524_v53, 2 }
0x23c7   :  { %v1531_v38 = vadd.f32 %v1529_v54, %v2562_v36 }
0x23c9   :  { %1940 = vtanh.f32 %v1531_v38  ;;  %v1532_v20 = vmul.f32 0.5, %v1531_v38 }
0x23cb   :  { %1942 = vtanh.f32 %v1532_v20 }
0x23cc   :  { %v1526_v56 = vpop.f32.mrf.mxu1 }
0x23cf   :  { %v1941_v58 = vpop.eup %1940 }
0x23d0   :  { %1542 = vrot.lane.b32.xlu0 %v1941_v58, %s2226_s1 }
0x23d1   :  { %v1943_v36 = vpop.eup %1942 }
0x23d2   :  { %v1534_v60 = vadd.f32 1.0, %v1943_v36 }
0x23d4   :  { %v1535_v61 = vmul.f32 0.5, %v1534_v60 }
0x23d6   :  { %v1540_v5 = vmul.f32 %v1538_v3, %v1535_v61 }
0x23d8   :  { %1060 = vrot.lane.b32.xlu0 %v2529_v4, %s2236_s8 }
0x23e0   :  { %1275 = vrot.lane.b32.xlu0 %v2556_v31, %s2236_s8 }
0x23e8   :  { %1487 = vrot.lane.b32.xlu0 %v1485_v57, %s2236_s8 }
0x23f0   :  { %946 = vrot.lane.b32.xlu0 %v2500_v47, %s2237_s15 }
0x2442   :  { %v1543_v62 = vpop.permute.xlu0 %1542 }
0x2443   :  { %v1545_v63 = vmul.f32 %v1543_v62, %v1535_v61 }
0x2445   :  { %1547 = vrot.lane.b32.xlu1 %v1545_v63, %s2236_s8 }
0x244a   :  { %v1061_v1 = vpop.permute.xlu0 %1060 }
0x244b   :  { %1063 = vst.msk [vmem:[#allocation22] sm:$0x1] %vm435_vm3, %v1061_v1 }
0x244d   :  { %1131 = vrot.lane.b32.xlu1 %v2538_v40, %s2236_s8 }
0x2452   :  { %v1276_v4 = vpop.permute.xlu0 %1275 }
0x2453   :  { %1278 = vst.msk [vmem:[#allocation22] sm:$0x8] %vm653_vm4, %v1276_v4 }
0x2455   :  { %1344 = vrot.lane.b32.xlu1 %v2568_v55, %s2236_s8 }
0x245a   :  { %v1488_v47 = vpop.permute.xlu0 %1487 }
0x245b   :  { %1490 = vst.msk [vmem:[#allocation22 + $0x4] sm:$0x4] %vm580_vm5, %v1488_v47 }
0x2462   :  { %v947_v31 = vpop.permute.xlu0 %946 }
0x2463   :  { %949 = vst.msk [vmem:[#allocation3 - $0x6] sm:$0xc0] %vm943_vm7, %v947_v31 }
0x24b7   :  { %v1548_v7 = vpop.permute.xlu1 %1547 }
0x24b8   :  { %v1550_v9 = vadd.f32 %v1548_v7, %v1540_v5 }
0x24ba   :  { %1944 = vtanh.f32 %v1550_v9 }
0x24bf   :  { %v1132_v10 = vpop.permute.xlu1 %1131 }
0x24c0   :  { %v1945_v40 = vpop.eup %1944  ;;  %1134 = vst.msk [vmem:[#allocation22] sm:$0x2] %vm507_vm6, %v1132_v10 }
0x24c1   :  { %1553 = vrot.lane.b32.xlu2 %v1945_v40, %s2226_s1 }
0x24c7   :  { %v1345_v11 = vpop.permute.xlu1 %1344 }
0x24c8   :  { %1347 = vst.msk [vmem:[#allocation22 + $0x4] sm:$0x1] %vm435_vm3, %v1345_v11 }
0x24c9   :  { %1203 = vrot.lane.b32.xlu2 %v2547_v2, %s2236_s8 }
0x24d1   :  { %1415 = vrot.lane.b32.xlu2 %v2577_v21, %s2236_s8 }
0x24d9   :  { %940 = vrot.lane.b32.xlu2 %v2510_v51, %s2236_s8 }
0x24e1   :  { %1569 = vrot.lane.b32.xlu2 %v1550_v9, %s2237_s15 }
0x251b   :  { %v1554_v55 = vpop.permute.xlu2 %1553 }
0x251c   :  { %v1556_v41 = vmul.f32 %v1554_v55, %v1535_v61 }
0x251e   :  { %v1557_v12 = vpack.c.bf16 %v1556_v41, %v1556_v41 }
0x2520   :  { %1559 = vrot.lane.b32.xlu1 %v1557_v12, %s2236_s8 }
0x2523   :  { %v1204_v13 = vpop.permute.xlu2 %1203 }
0x2524   :  { %1206 = vst.msk [vmem:[#allocation22] sm:$0x4] %vm580_vm5, %v1204_v13 }
0x2528   :  { %1564 = vrot.lane.b32.xlu1 %v1556_v41, %s2236_s8 }
0x252b   :  { %v1416_v14 = vpop.permute.xlu2 %1415 }
0x252c   :  { %1418 = vst.msk [vmem:[#allocation22 + $0x4] sm:$0x2] %vm507_vm6, %v1416_v14 }
0x2533   :  { %v941_v2 = vpop.permute.xlu2 %940 }
0x2534   :  { %944 = vst.msk [vmem:[#allocation2 - $0x6] sm:$0xc0] %vm943_vm7, %v941_v2 }
0x253b   :  { %v1570_v15 = vpop.permute.xlu2 %1569 }
0x253c   :  { %1572 = vst.msk [vmem:[#allocation3 - $0x4] sm:$0xc0] %vm943_vm7, %v1570_v15 }
0x2592   :  { %v1560_v51 = vpop.permute.xlu1 %1559 }
0x2593   :  { %1562 = vst.msk [vmem:[#allocation22 + $0x4] sm:$0x8] %vm653_vm4, %v1560_v51 }
0x2594   :  { %1585 = dma.vmem_to_hbm [thread:$0]  %s1578_s25, 128, %s1580_s27, [#allocation7], %s2226_s1, %s2226_s1, %s2227_s19  }
0x259a   :  { %v1565_v16 = vpop.permute.xlu1 %1564 }
0x259b   :  { %1567 = vst.msk [vmem:[#allocation2 - $0x4] sm:$0xc0] %vm943_vm7, %v1565_v16 }
0x259c   :  { %2222 = dma.done.wait [#allocation7], 128  }
0x259d   :  { %2223 = vsyncadd [#allocation7], 4294967168 }
0x259e   :  { %1590 = vsyncpa [#allocation6], 1 }
0x259f   :  { %1591 = vsyncpa [#allocation9], 1 }
0x25a0   :  { %1592 = vsyncpa [#allocation12], 1 }
0x25a1   :  { %1593 = vsyncpa [#allocation15], 1 }
0x25a2   :  { %1594 = vsyncpa [#allocation18], 1 }
0x25a3   :  { %1595 = vsyncpa [#allocation21], 1 }
0x25a4   :  { %1596 = vsyncpa [#allocation7], 1 }

</bundles_post_ra>
